<compile_context>
chip_gen: v6e
topology: v6e:2x2x1
jax: 0.10.0
libtpu: 0.0.40
codegen_flags: <defaults>
</compile_context>

<pallas_src>
import math

import jax
import jax.numpy as jnp
import numpy as np
from jax.experimental import pallas as pl
from jax.experimental.pallas import tpu as pltpu

# Images per grid step.  Sized so the largest per-step working set (stage-2
# im2col patches + double buffering + f32 matmul intermediates, including the
# 128-lane VMEM padding of the narrow 20/25/50-wide arrays) stays well under
# the scoped-VMEM budget on every generation (v7x has only 64 MiB physical).
_MAX_IMAGES_PER_TILE = 16
_VMEM_LIMIT_BYTES = 32 * 1024 * 1024

_COMPILER_PARAMS = pltpu.CompilerParams(
    dimension_semantics=("parallel",),   # batch-tile axis -> v7x's 2nd TensorCore
    vmem_limit_bytes=_VMEM_LIMIT_BYTES,
)


# ----------------------------------------------------------------------------
# Pallas kernels
# ----------------------------------------------------------------------------
def _conv_pool_kernel(p_ref, w_ref, b_ref, o_ref):
    """Fused conv (as im2col matmul) + bias + ReLU + 2x2/2 max-pool.

    p_ref : [4, TM, K] bf16  im2col patches; axis 0 = position inside the 2x2
                             pooling window, rows = (image, pooled_h, pooled_w).
    w_ref : [K, C]     bf16  conv weight, rows in (kh, kw, cin) order.
    b_ref : [1, C]     f32   conv bias.
    o_ref : [TM, C]    bf16  pooled activations, rows = (image, pooled_h, pooled_w).
    """
    w = w_ref[...]
    # Running max over the 4 pool-window positions of the raw conv outputs;
    # keeps at most two f32 [TM, C] intermediates live in VMEM at a time.
    m = jnp.dot(p_ref[0], w, preferred_element_type=jnp.float32)
    m = jnp.maximum(m, jnp.dot(p_ref[1], w, preferred_element_type=jnp.float32))
    m = jnp.maximum(m, jnp.dot(p_ref[2], w, preferred_element_type=jnp.float32))
    m = jnp.maximum(m, jnp.dot(p_ref[3], w, preferred_element_type=jnp.float32))
    # Bias-add and ReLU commute with max -> applied once, after pooling (f32).
    o_ref[...] = jnp.maximum(m + b_ref[...], 0.0).astype(o_ref.dtype)


def _fc_kernel(x_ref, w1_ref, b1_ref, w2_ref, b2_ref, o_ref):
    """Fused fc1 + bias + ReLU + fc2 + bias; the hidden layer stays in VMEM."""
    h = jnp.dot(x_ref[...], w1_ref[...], preferred_element_type=jnp.float32)
    h = jnp.maximum(h + b1_ref[...], 0.0).astype(jnp.bfloat16)
    y = jnp.dot(h, w2_ref[...], preferred_element_type=jnp.float32)
    o_ref[...] = (y + b2_ref[...]).astype(o_ref.dtype)


# ----------------------------------------------------------------------------
# pallas_call wrappers (gridded over batch tiles, software-pipelined DMA)
# ----------------------------------------------------------------------------
def _conv_pool_stage(patches, w, b, tile_rows):
    """patches [4, M, K] -> pooled activations [M, C] (bf16)."""
    _, m_rows, k = patches.shape
    c = w.shape[1]
    grid = (m_rows // tile_rows,)
    flops = 2 * 4 * m_rows * k * c + 8 * m_rows * c
    bytes_accessed = (patches.size * patches.dtype.itemsize
                      + w.size * w.dtype.itemsize
                      + b.size * b.dtype.itemsize
                      + m_rows * c * 2)
    return pl.pallas_call(
        _conv_pool_kernel,
        out_shape=jax.ShapeDtypeStruct((m_rows, c), jnp.bfloat16),
        grid=grid,
        in_specs=[
            pl.BlockSpec((4, tile_rows, k), lambda i: (0, i, 0)),
            pl.BlockSpec((k, c), lambda i: (0, 0)),
            pl.BlockSpec((1, c), lambda i: (0, 0)),
        ],
        out_specs=pl.BlockSpec((tile_rows, c), lambda i: (i, 0)),
        compiler_params=_COMPILER_PARAMS,
        cost_estimate=pl.CostEstimate(flops=int(flops), transcendentals=0,
                                      bytes_accessed=int(bytes_accessed)),
    )(patches, w, b)


def _fc_stage(x, w1, b1, w2, b2, tile_rows):
    """x [M, 800] bf16 -> logits [M, n_classes] f32 (fc1+relu+fc2 fused)."""
    m_rows, k1 = x.shape
    hidden = w1.shape[1]
    n_out = w2.shape[1]
    grid = (m_rows // tile_rows,)
    flops = 2 * m_rows * (k1 * hidden + hidden * n_out)
    bytes_accessed = (x.size * x.dtype.itemsize
                      + w1.size * w1.dtype.itemsize + b1.size * b1.dtype.itemsize
                      + w2.size * w2.dtype.itemsize + b2.size * b2.dtype.itemsize
                      + m_rows * n_out * 4)
    return pl.pallas_call(
        _fc_kernel,
        out_shape=jax.ShapeDtypeStruct((m_rows, n_out), jnp.float32),
        grid=grid,
        in_specs=[
            pl.BlockSpec((tile_rows, k1), lambda i: (i, 0)),
            pl.BlockSpec((k1, hidden), lambda i: (0, 0)),
            pl.BlockSpec((1, hidden), lambda i: (0, 0)),
            pl.BlockSpec((hidden, n_out), lambda i: (0, 0)),
            pl.BlockSpec((1, n_out), lambda i: (0, 0)),
        ],
        out_specs=pl.BlockSpec((tile_rows, n_out), lambda i: (i, 0)),
        compiler_params=_COMPILER_PARAMS,
        cost_estimate=pl.CostEstimate(flops=int(flops), transcendentals=0,
                                      bytes_accessed=int(bytes_accessed)),
    )(x, w1, b1, w2, b2)


# ----------------------------------------------------------------------------
# Plain-JAX glue: pool-window-grouped im2col (the only HBM materialization left)
# ----------------------------------------------------------------------------
def _pooled_im2col(x, k):
    """im2col for a valid k x k / stride-1 conv followed by 2x2 / stride-2 pooling.

    x: [B, H, W, C] -> [4, B*ph*pw, k*k*C].  Axis 0 enumerates the position
    inside the 2x2 pooling window; rows are (image, pooled_h, pooled_w);
    columns are in (kh, kw, cin) order (matching the pre-transformed weights).
    """
    bsz, h, w, c = x.shape
    oh, ow = h - k + 1, w - k + 1
    ph, pw = oh // 2, ow // 2
    cols = [x[:, kh:kh + oh, kw:kw + ow, :] for kh in range(k) for kw in range(k)]
    pat = jnp.concatenate(cols, axis=-1)                 # [B, oh, ow, k*k*C]
    pat = pat.reshape(bsz, ph, 2, pw, 2, k * k * c)      # oh=(ph,di), ow=(pw,dj)
    pat = pat.transpose(2, 4, 0, 1, 3, 5)                # [di, dj, B, ph, pw, K]
    return pat.reshape(4, bsz * ph * pw, k * k * c)


# ----------------------------------------------------------------------------
# Parameters: PyTorch layouts -> kernel layouts (done ONCE, off the hot path)
# ----------------------------------------------------------------------------
def init_torch_params(n_classes=10, seed=0):
    """Random params in PyTorch's native layouts (what a state_dict would hold)."""
    key = jax.random.PRNGKey(seed)
    ks = jax.random.split(key, 8)

    def u(k, shape, fan_in):
        bound = 1.0 / math.sqrt(fan_in)
        return jax.random.uniform(k, shape, jnp.float32, -bound, bound)

    return {
        "conv1.weight": u(ks[0], (20, 1, 5, 5), 25),
        "conv1.bias": u(ks[1], (20,), 25),
        "conv2.weight": u(ks[2], (50, 20, 5, 5), 500),
        "conv2.bias": u(ks[3], (50,), 500),
        "fc1.weight": u(ks[4], (500, 800), 800),     # [out, in], in = (c, h, w)
        "fc1.bias": u(ks[5], (500,), 800),
        "fc2.weight": u(ks[6], (n_classes, 500), 500),
        "fc2.bias": u(ks[7], (n_classes,), 500),
    }


def prepare_params(pt):
    """One-time transform of PyTorch-layout weights into kernel layouts (bf16)."""
    n_classes = pt["fc2.weight"].shape[0]
    # conv weights: [Cout, Cin, KH, KW] -> [(kh, kw, cin), Cout]
    w1 = jnp.transpose(pt["conv1.weight"], (2, 3, 1, 0)).reshape(25, 20)
    w2 = jnp.transpose(pt["conv2.weight"], (2, 3, 1, 0)).reshape(500, 50)
    # fc1: [out, in=(c,h,w)] -> [in=(h,w,c), out]; the kernel-side flatten is in
    # (h, w, c) order, so no runtime activation transpose is needed before fc1.
    wfc1 = (pt["fc1.weight"].reshape(500, 50, 4, 4)
            .transpose(2, 3, 1, 0).reshape(800, 500))
    wfc2 = pt["fc2.weight"].T
    return {
        "w1": w1.astype(jnp.bfloat16),
        "b1": pt["conv1.bias"].reshape(1, 20).astype(jnp.float32),
        "w2": w2.astype(jnp.bfloat16),
        "b2": pt["conv2.bias"].reshape(1, 50).astype(jnp.float32),
        "wfc1": wfc1.astype(jnp.bfloat16),
        "bfc1": pt["fc1.bias"].reshape(1, 500).astype(jnp.float32),
        "wfc2": wfc2.astype(jnp.bfloat16),
        "bfc2": pt["fc2.bias"].reshape(1, n_classes).astype(jnp.float32),
    }


# ----------------------------------------------------------------------------
# Model forward
# ----------------------------------------------------------------------------
def convnet_forward(x_nchw, params):
    """x_nchw: [B, 1, 28, 28] f32 -> logits [B, n_classes] f32."""
    bsz = x_nchw.shape[0]
    tile_imgs = min(bsz, _MAX_IMAGES_PER_TILE)
    pad = (-bsz) % tile_imgs
    if pad:   # pad batch to a multiple of the tile; padded rows are sliced off
        x_nchw = jnp.concatenate(
            [x_nchw, jnp.zeros((pad,) + x_nchw.shape[1:], x_nchw.dtype)], axis=0)
    bp = bsz + pad

    # NCHW -> NHWC; bf16 MXU operands (accumulation stays f32 inside kernels).
    x = jnp.transpose(x_nchw, (0, 2, 3, 1)).astype(jnp.bfloat16)     # [Bp,28,28,1]

    # Stage 1: conv1(1->20, 5x5) + ReLU + 2x2 maxpool, one fused kernel.
    p1 = _pooled_im2col(x, 5)                                        # [4, Bp*144, 25]
    h1 = _conv_pool_stage(p1, params["w1"], params["b1"], tile_imgs * 144)
    h1 = h1.reshape(bp, 12, 12, 20)                                  # pooled NHWC

    # Stage 2: conv2(20->50, 5x5) + ReLU + 2x2 maxpool, one fused kernel.
    p2 = _pooled_im2col(h1, 5)                                       # [4, Bp*16, 500]
    h2 = _conv_pool_stage(p2, params["w2"], params["b2"], tile_imgs * 16)

    # Flatten: rows of h2 are (image, ph, pw) so this is (h, w, c) order per
    # image; fc1's weight rows were permuted to that order at init.
    flat = h2.reshape(bp, 4 * 4 * 50)                                # [Bp, 800]

    logits = _fc_stage(flat, params["wfc1"], params["bfc1"],
                       params["wfc2"], params["bfc2"], tile_imgs)
    return logits[:bsz]


def reference_forward(x_nchw, pt):
    """Independent pure-XLA f32 reference of the PyTorch module (for validation)."""
    dn = ("NCHW", "OIHW", "NCHW")
    y = jax.lax.conv_general_dilated(x_nchw, pt["conv1.weight"], (1, 1), "VALID",
                                     dimension_numbers=dn)
    y = jax.nn.relu(y + pt["conv1.bias"].reshape(1, -1, 1, 1))
    y = jax.lax.reduce_window(y, -jnp.inf, jax.lax.max,
                              (1, 1, 2, 2), (1, 1, 2, 2), "VALID")
    y = jax.lax.conv_general_dilated(y, pt["conv2.weight"], (1, 1), "VALID",
                                     dimension_numbers=dn)
    y = jax.nn.relu(y + pt["conv2.bias"].reshape(1, -1, 1, 1))
    y = jax.lax.reduce_window(y, -jnp.inf, jax.lax.max,
                              (1, 1, 2, 2), (1, 1, 2, 2), "VALID")
    y = y.reshape(y.shape[0], -1)                        # (c, h, w) flatten order
    y = jax.nn.relu(y @ pt["fc1.weight"].T + pt["fc1.bias"])
    return y @ pt["fc2.weight"].T + pt["fc2.bias"]


if __name__ == "__main__":
    n_classes = 10
    torch_params = init_torch_params(n_classes)
    params = prepare_params(torch_params)

    key = jax.random.PRNGKey(0)
    # 28x28 single-channel input is what the 4*4*50 flatten implies.
    x = jax.random.normal(key, (2, 1, 28, 28), dtype=jnp.float32)

    fwd = jax.jit(convnet_forward)
    logits = fwd(x, params)
    jax.block_until_ready(logits)

    assert logits.shape == (2, n_classes)
    assert logits.dtype == jnp.float32

    # Validate against the independent f32 XLA reference (loose tolerance since
    # the Pallas path uses bf16 MXU operands with f32 accumulation).
    ref = jax.jit(reference_forward)(x, torch_params)
    np.testing.assert_allclose(np.asarray(logits), np.asarray(ref),
                               rtol=1e-1, atol=5e-2)
    print("KERNEL_OK")
</pallas_src>

<mosaic_0001>
module attributes {stable_mosaic.version = 11 : i64} {
  func.func @_conv_pool_kernel(%arg0: i32, %arg1: memref<4x288x25xbf16, #tpu.memory_space<vmem>>, %arg2: memref<25x20xbf16, #tpu.memory_space<vmem>>, %arg3: memref<1x20xf32, #tpu.memory_space<vmem>>, %arg4: memref<288x20xbf16, #tpu.memory_space<vmem>>) attributes {dimension_semantics = [#tpu.dimension_semantics<parallel>], iteration_bounds = array<i64: 1>, scalar_prefetch = 0 : i64, scratch_operands = 0 : i64, tpu.core_type = #tpu.core_type<tc>, window_params = [{transform_indices = @transform_0, window_bounds = array<i64: 4, 288, 25>}, {pipeline_mode = #tpu.pipeline_mode<synchronous>, transform_indices = @transform_1, window_bounds = array<i64: 25, 20>}, {pipeline_mode = #tpu.pipeline_mode<synchronous>, transform_indices = @transform_2, window_bounds = array<i64: 1, 20>}, {transform_indices = @transform_3, window_bounds = array<i64: 288, 20>}]} {
    %c0 = arith.constant 0 : index
    %c0_0 = arith.constant 0 : index
    %0 = vector.load %arg2[%c0, %c0_0] : memref<25x20xbf16, #tpu.memory_space<vmem>>, vector<25x20xbf16>
    %c0_1 = arith.constant 0 : index
    %c0_2 = arith.constant 0 : index
    %c0_3 = arith.constant 0 : index
    %1 = vector.load %arg1[%c0_1, %c0_2, %c0_3] : memref<4x288x25xbf16, #tpu.memory_space<vmem>>, vector<1x288x25xbf16>
    %2 = vector.shape_cast %1 : vector<1x288x25xbf16> to vector<288x25xbf16>
    %cst = arith.constant dense<0.000000e+00> : vector<288x20xf32>
    %3 = tpu.matmul %2, %0, %cst {dimension_numbers = #tpu.dot_dimension_numbers<[1], [0], [0], [1], [0, 0, 1, 1], [], []>} : vector<288x25xbf16>, vector<25x20xbf16>, vector<288x20xf32> -> vector<288x20xf32>
    %c1 = arith.constant 1 : index
    %c0_4 = arith.constant 0 : index
    %c0_5 = arith.constant 0 : index
    %4 = vector.load %arg1[%c1, %c0_4, %c0_5] : memref<4x288x25xbf16, #tpu.memory_space<vmem>>, vector<1x288x25xbf16>
    %5 = vector.shape_cast %4 : vector<1x288x25xbf16> to vector<288x25xbf16>
    %cst_6 = arith.constant dense<0.000000e+00> : vector<288x20xf32>
    %6 = tpu.matmul %5, %0, %cst_6 {dimension_numbers = #tpu.dot_dimension_numbers<[1], [0], [0], [1], [0, 0, 1, 1], [], []>} : vector<288x25xbf16>, vector<25x20xbf16>, vector<288x20xf32> -> vector<288x20xf32>
    %7 = arith.maximumf %3, %6 : vector<288x20xf32>
    %c2 = arith.constant 2 : index
    %c0_7 = arith.constant 0 : index
    %c0_8 = arith.constant 0 : index
    %8 = vector.load %arg1[%c2, %c0_7, %c0_8] : memref<4x288x25xbf16, #tpu.memory_space<vmem>>, vector<1x288x25xbf16>
    %9 = vector.shape_cast %8 : vector<1x288x25xbf16> to vector<288x25xbf16>
    %cst_9 = arith.constant dense<0.000000e+00> : vector<288x20xf32>
    %10 = tpu.matmul %9, %0, %cst_9 {dimension_numbers = #tpu.dot_dimension_numbers<[1], [0], [0], [1], [0, 0, 1, 1], [], []>} : vector<288x25xbf16>, vector<25x20xbf16>, vector<288x20xf32> -> vector<288x20xf32>
    %11 = arith.maximumf %7, %10 : vector<288x20xf32>
    %c3 = arith.constant 3 : index
    %c0_10 = arith.constant 0 : index
    %c0_11 = arith.constant 0 : index
    %12 = vector.load %arg1[%c3, %c0_10, %c0_11] : memref<4x288x25xbf16, #tpu.memory_space<vmem>>, vector<1x288x25xbf16>
    %13 = vector.shape_cast %12 : vector<1x288x25xbf16> to vector<288x25xbf16>
    %cst_12 = arith.constant dense<0.000000e+00> : vector<288x20xf32>
    %14 = tpu.matmul %13, %0, %cst_12 {dimension_numbers = #tpu.dot_dimension_numbers<[1], [0], [0], [1], [0, 0, 1, 1], [], []>} : vector<288x25xbf16>, vector<25x20xbf16>, vector<288x20xf32> -> vector<288x20xf32>
    %15 = arith.maximumf %11, %14 : vector<288x20xf32>
    %c0_13 = arith.constant 0 : index
    %c0_14 = arith.constant 0 : index
    %16 = vector.load %arg3[%c0_13, %c0_14] : memref<1x20xf32, #tpu.memory_space<vmem>>, vector<1x20xf32>
    %17 = vector.broadcast %16 : vector<1x20xf32> to vector<288x20xf32>
    %18 = arith.addf %15, %17 : vector<288x20xf32>
    %cst_15 = arith.constant 0.000000e+00 : f32
    %19 = vector.broadcast %cst_15 : f32 to vector<288x20xf32>
    %20 = arith.maximumf %18, %19 : vector<288x20xf32>
    %21 = arith.truncf %20 : vector<288x20xf32> to vector<288x20xbf16>
    %c0_16 = arith.constant 0 : index
    %c0_17 = arith.constant 0 : index
    %22 = vector.load %arg4[%c0_16, %c0_17] : memref<288x20xbf16, #tpu.memory_space<vmem>>, vector<288x20xbf16>
    tpu.vector_store %arg4[%c0_16, %c0_17], %21 {strides = array<i32>} : memref<288x20xbf16, #tpu.memory_space<vmem>>, vector<288x20xbf16>,
    return
  }
  func.func @transform_0(%arg0: i32) -> (i32, i32, i32) {
    %c0_i32 = arith.constant 0 : i32
    %c0_i32_0 = arith.constant 0 : i32
    %c0_i32_1 = arith.constant 0 : i32
    return %c0_i32, %arg0, %c0_i32_0 : i32, i32, i32
  }
  func.func @transform_1(%arg0: i32) -> (i32, i32) {
    %c0_i32 = arith.constant 0 : i32
    %c0_i32_0 = arith.constant 0 : i32
    %c0_i32_1 = arith.constant 0 : i32
    return %c0_i32, %c0_i32_0 : i32, i32
  }
  func.func @transform_2(%arg0: i32) -> (i32, i32) {
    %c0_i32 = arith.constant 0 : i32
    %c0_i32_0 = arith.constant 0 : i32
    %c0_i32_1 = arith.constant 0 : i32
    return %c0_i32, %c0_i32_0 : i32, i32
  }
  func.func @transform_3(%arg0: i32) -> (i32, i32) {
    %c0_i32 = arith.constant 0 : i32
    %c0_i32_0 = arith.constant 0 : i32
    return %arg0, %c0_i32 : i32, i32
  }
}

module attributes {stable_mosaic.version = 11 : i64} {
  func.func @_conv_pool_kernel(%arg0: i32, %arg1: memref<4x32x500xbf16, #tpu.memory_space<vmem>>, %arg2: memref<500x50xbf16, #tpu.memory_space<vmem>>, %arg3: memref<1x50xf32, #tpu.memory_space<vmem>>, %arg4: memref<32x50xbf16, #tpu.memory_space<vmem>>) attributes {dimension_semantics = [#tpu.dimension_semantics<parallel>], iteration_bounds = array<i64: 1>, scalar_prefetch = 0 : i64, scratch_operands = 0 : i64, tpu.core_type = #tpu.core_type<tc>, window_params = [{transform_indices = @transform_0, window_bounds = array<i64: 4, 32, 500>}, {pipeline_mode = #tpu.pipeline_mode<synchronous>, transform_indices = @transform_1, window_bounds = array<i64: 500, 50>}, {pipeline_mode = #tpu.pipeline_mode<synchronous>, transform_indices = @transform_2, window_bounds = array<i64: 1, 50>}, {transform_indices = @transform_3, window_bounds = array<i64: 32, 50>}]} {
    %c0 = arith.constant 0 : index
    %c0_0 = arith.constant 0 : index
    %0 = vector.load %arg2[%c0, %c0_0] : memref<500x50xbf16, #tpu.memory_space<vmem>>, vector<500x50xbf16>
    %c0_1 = arith.constant 0 : index
    %c0_2 = arith.constant 0 : index
    %c0_3 = arith.constant 0 : index
    %1 = vector.load %arg1[%c0_1, %c0_2, %c0_3] : memref<4x32x500xbf16, #tpu.memory_space<vmem>>, vector<1x32x500xbf16>
    %2 = vector.shape_cast %1 : vector<1x32x500xbf16> to vector<32x500xbf16>
    %cst = arith.constant dense<0.000000e+00> : vector<32x50xf32>
    %3 = tpu.matmul %2, %0, %cst {dimension_numbers = #tpu.dot_dimension_numbers<[1], [0], [0], [1], [0, 0, 1, 1], [], []>} : vector<32x500xbf16>, vector<500x50xbf16>, vector<32x50xf32> -> vector<32x50xf32>
    %c1 = arith.constant 1 : index
    %c0_4 = arith.constant 0 : index
    %c0_5 = arith.constant 0 : index
    %4 = vector.load %arg1[%c1, %c0_4, %c0_5] : memref<4x32x500xbf16, #tpu.memory_space<vmem>>, vector<1x32x500xbf16>
    %5 = vector.shape_cast %4 : vector<1x32x500xbf16> to vector<32x500xbf16>
    %cst_6 = arith.constant dense<0.000000e+00> : vector<32x50xf32>
    %6 = tpu.matmul %5, %0, %cst_6 {dimension_numbers = #tpu.dot_dimension_numbers<[1], [0], [0], [1], [0, 0, 1, 1], [], []>} : vector<32x500xbf16>, vector<500x50xbf16>, vector<32x50xf32> -> vector<32x50xf32>
    %7 = arith.maximumf %3, %6 : vector<32x50xf32>
    %c2 = arith.constant 2 : index
    %c0_7 = arith.constant 0 : index
    %c0_8 = arith.constant 0 : index
    %8 = vector.load %arg1[%c2, %c0_7, %c0_8] : memref<4x32x500xbf16, #tpu.memory_space<vmem>>, vector<1x32x500xbf16>
    %9 = vector.shape_cast %8 : vector<1x32x500xbf16> to vector<32x500xbf16>
    %cst_9 = arith.constant dense<0.000000e+00> : vector<32x50xf32>
    %10 = tpu.matmul %9, %0, %cst_9 {dimension_numbers = #tpu.dot_dimension_numbers<[1], [0], [0], [1], [0, 0, 1, 1], [], []>} : vector<32x500xbf16>, vector<500x50xbf16>, vector<32x50xf32> -> vector<32x50xf32>
    %11 = arith.maximumf %7, %10 : vector<32x50xf32>
    %c3 = arith.constant 3 : index
    %c0_10 = arith.constant 0 : index
    %c0_11 = arith.constant 0 : index
    %12 = vector.load %arg1[%c3, %c0_10, %c0_11] : memref<4x32x500xbf16, #tpu.memory_space<vmem>>, vector<1x32x500xbf16>
    %13 = vector.shape_cast %12 : vector<1x32x500xbf16> to vector<32x500xbf16>
    %cst_12 = arith.constant dense<0.000000e+00> : vector<32x50xf32>
    %14 = tpu.matmul %13, %0, %cst_12 {dimension_numbers = #tpu.dot_dimension_numbers<[1], [0], [0], [1], [0, 0, 1, 1], [], []>} : vector<32x500xbf16>, vector<500x50xbf16>, vector<32x50xf32> -> vector<32x50xf32>
    %15 = arith.maximumf %11, %14 : vector<32x50xf32>
    %c0_13 = arith.constant 0 : index
    %c0_14 = arith.constant 0 : index
    %16 = vector.load %arg3[%c0_13, %c0_14] : memref<1x50xf32, #tpu.memory_space<vmem>>, vector<1x50xf32>
    %17 = vector.broadcast %16 : vector<1x50xf32> to vector<32x50xf32>
    %18 = arith.addf %15, %17 : vector<32x50xf32>
    %cst_15 = arith.constant 0.000000e+00 : f32
    %19 = vector.broadcast %cst_15 : f32 to vector<32x50xf32>
    %20 = arith.maximumf %18, %19 : vector<32x50xf32>
    %21 = arith.truncf %20 : vector<32x50xf32> to vector<32x50xbf16>
    %c0_16 = arith.constant 0 : index
    %c0_17 = arith.constant 0 : index
    %22 = vector.load %arg4[%c0_16, %c0_17] : memref<32x50xbf16, #tpu.memory_space<vmem>>, vector<32x50xbf16>
    tpu.vector_store %arg4[%c0_16, %c0_17], %21 {strides = array<i32>} : memref<32x50xbf16, #tpu.memory_space<vmem>>, vector<32x50xbf16>,
    return
  }
  func.func @transform_0(%arg0: i32) -> (i32, i32, i32) {
    %c0_i32 = arith.constant 0 : i32
    %c0_i32_0 = arith.constant 0 : i32
    %c0_i32_1 = arith.constant 0 : i32
    return %c0_i32, %arg0, %c0_i32_0 : i32, i32, i32
  }
  func.func @transform_1(%arg0: i32) -> (i32, i32) {
    %c0_i32 = arith.constant 0 : i32
    %c0_i32_0 = arith.constant 0 : i32
    %c0_i32_1 = arith.constant 0 : i32
    return %c0_i32, %c0_i32_0 : i32, i32
  }
  func.func @transform_2(%arg0: i32) -> (i32, i32) {
    %c0_i32 = arith.constant 0 : i32
    %c0_i32_0 = arith.constant 0 : i32
    %c0_i32_1 = arith.constant 0 : i32
    return %c0_i32, %c0_i32_0 : i32, i32
  }
  func.func @transform_3(%arg0: i32) -> (i32, i32) {
    %c0_i32 = arith.constant 0 : i32
    %c0_i32_0 = arith.constant 0 : i32
    return %arg0, %c0_i32 : i32, i32
  }
}

module attributes {stable_mosaic.version = 11 : i64} {
  func.func @_fc_kernel(%arg0: i32, %arg1: memref<2x800xbf16, #tpu.memory_space<vmem>>, %arg2: memref<800x500xbf16, #tpu.memory_space<vmem>>, %arg3: memref<1x500xf32, #tpu.memory_space<vmem>>, %arg4: memref<500x10xbf16, #tpu.memory_space<vmem>>, %arg5: memref<1x10xf32, #tpu.memory_space<vmem>>, %arg6: memref<2x10xf32, #tpu.memory_space<vmem>>) attributes {dimension_semantics = [#tpu.dimension_semantics<parallel>], iteration_bounds = array<i64: 1>, scalar_prefetch = 0 : i64, scratch_operands = 0 : i64, tpu.core_type = #tpu.core_type<tc>, window_params = [{transform_indices = @transform_0, window_bounds = array<i64: 2, 800>}, {pipeline_mode = #tpu.pipeline_mode<synchronous>, transform_indices = @transform_1, window_bounds = array<i64: 800, 500>}, {pipeline_mode = #tpu.pipeline_mode<synchronous>, transform_indices = @transform_2, window_bounds = array<i64: 1, 500>}, {pipeline_mode = #tpu.pipeline_mode<synchronous>, transform_indices = @transform_3, window_bounds = array<i64: 500, 10>}, {pipeline_mode = #tpu.pipeline_mode<synchronous>, transform_indices = @transform_4, window_bounds = array<i64: 1, 10>}, {transform_indices = @transform_5, window_bounds = array<i64: 2, 10>}]} {
    %c0 = arith.constant 0 : index
    %c0_0 = arith.constant 0 : index
    %0 = vector.load %arg1[%c0, %c0_0] : memref<2x800xbf16, #tpu.memory_space<vmem>>, vector<2x800xbf16>
    %c0_1 = arith.constant 0 : index
    %c0_2 = arith.constant 0 : index
    %1 = vector.load %arg2[%c0_1, %c0_2] : memref<800x500xbf16, #tpu.memory_space<vmem>>, vector<800x500xbf16>
    %cst = arith.constant dense<0.000000e+00> : vector<2x500xf32>
    %2 = tpu.matmul %0, %1, %cst {dimension_numbers = #tpu.dot_dimension_numbers<[1], [0], [0], [1], [0, 0, 1, 1], [], []>} : vector<2x800xbf16>, vector<800x500xbf16>, vector<2x500xf32> -> vector<2x500xf32>
    %c0_3 = arith.constant 0 : index
    %c0_4 = arith.constant 0 : index
    %3 = vector.load %arg3[%c0_3, %c0_4] : memref<1x500xf32, #tpu.memory_space<vmem>>, vector<1x500xf32>
    %4 = vector.broadcast %3 : vector<1x500xf32> to vector<2x500xf32>
    %5 = arith.addf %2, %4 : vector<2x500xf32>
    %cst_5 = arith.constant 0.000000e+00 : f32
    %6 = vector.broadcast %cst_5 : f32 to vector<2x500xf32>
    %7 = arith.maximumf %5, %6 : vector<2x500xf32>
    %8 = arith.truncf %7 : vector<2x500xf32> to vector<2x500xbf16>
    %c0_6 = arith.constant 0 : index
    %c0_7 = arith.constant 0 : index
    %9 = vector.load %arg4[%c0_6, %c0_7] : memref<500x10xbf16, #tpu.memory_space<vmem>>, vector<500x10xbf16>
    %cst_8 = arith.constant dense<0.000000e+00> : vector<2x10xf32>
    %10 = tpu.matmul %8, %9, %cst_8 {dimension_numbers = #tpu.dot_dimension_numbers<[1], [0], [0], [1], [0, 0, 1, 1], [], []>} : vector<2x500xbf16>, vector<500x10xbf16>, vector<2x10xf32> -> vector<2x10xf32>
    %c0_9 = arith.constant 0 : index
    %c0_10 = arith.constant 0 : index
    %11 = vector.load %arg5[%c0_9, %c0_10] : memref<1x10xf32, #tpu.memory_space<vmem>>, vector<1x10xf32>
    %12 = vector.broadcast %11 : vector<1x10xf32> to vector<2x10xf32>
    %13 = arith.addf %10, %12 : vector<2x10xf32>
    %c0_11 = arith.constant 0 : index
    %c0_12 = arith.constant 0 : index
    %14 = vector.load %arg6[%c0_11, %c0_12] : memref<2x10xf32, #tpu.memory_space<vmem>>, vector<2x10xf32>
    tpu.vector_store %arg6[%c0_11, %c0_12], %13 {strides = array<i32>} : memref<2x10xf32, #tpu.memory_space<vmem>>, vector<2x10xf32>,
    return
  }
  func.func @transform_0(%arg0: i32) -> (i32, i32) {
    %c0_i32 = arith.constant 0 : i32
    %c0_i32_0 = arith.constant 0 : i32
    return %arg0, %c0_i32 : i32, i32
  }
  func.func @transform_1(%arg0: i32) -> (i32, i32) {
    %c0_i32 = arith.constant 0 : i32
    %c0_i32_0 = arith.constant 0 : i32
    %c0_i32_1 = arith.constant 0 : i32
    return %c0_i32, %c0_i32_0 : i32, i32
  }
  func.func @transform_2(%arg0: i32) -> (i32, i32) {
    %c0_i32 = arith.constant 0 : i32
    %c0_i32_0 = arith.constant 0 : i32
    %c0_i32_1 = arith.constant 0 : i32
    return %c0_i32, %c0_i32_0 : i32, i32
  }
  func.func @transform_3(%arg0: i32) -> (i32, i32) {
    %c0_i32 = arith.constant 0 : i32
    %c0_i32_0 = arith.constant 0 : i32
    %c0_i32_1 = arith.constant 0 : i32
    return %c0_i32, %c0_i32_0 : i32, i32
  }
  func.func @transform_4(%arg0: i32) -> (i32, i32) {
    %c0_i32 = arith.constant 0 : i32
    %c0_i32_0 = arith.constant 0 : i32
    %c0_i32_1 = arith.constant 0 : i32
    return %c0_i32, %c0_i32_0 : i32, i32
  }
  func.func @transform_5(%arg0: i32) -> (i32, i32) {
    %c0_i32 = arith.constant 0 : i32
    %c0_i32_0 = arith.constant 0 : i32
    return %arg0, %c0_i32 : i32, i32
  }
}

</mosaic_0001>

<bundles_post_ra>
// kernel: convnet_forward.3
= control target key start
LH: loop header
LB: loop body
LE: loop exit
PB: predicated region body
PF: predicated region fallthrough
CT: control target
= control target key end

     0   :  { %vm211_vm0 = vcmask 1043456   ;;  %vm212_vm1 = vcmask 1044480   ;;  %v2483_v1 = vmov 65535   ;;  %vm156_vm2 = vcmask 203776   ;;  %s3307_s1 = inlined_call_operand.vmem [shape: bf16[25,20], index: 1, kind: input, shape index: {}]   ;;  %s3308_s0 = inlined_call_operand.vmem [shape: bf16[4,288,25], index: 0, kind: input, shape index: {}]   ;;  %s3309_s2 = inlined_call_operand.vmem [shape: f32[1,20], index: 2, kind: input, shape index: {}]   ;;  %s3310_s3 = inlined_call_operand.vmem [shape: bf16[288,20], index: 3, kind: output, shape index: {}]  }
   0x1   :  { %v2409_v0 = vld [vmem:[%s3307_s1 + $0x8] sm:$0x1f]   ;;  %v213_v2 = vsel %vm211_vm0, 4294967295, %v2483_v1  ;;  %v2411_v4 = vld [vmem:[%s3308_s0] sm:$0xff]   ;;  %v2412_v7 = vld [vmem:[%s3308_s0 + $0x90] sm:$0xff]   ;;  %vm1800_vm3 = vcmask 158720  }
   0x2   :  { %v214_v3 = vsel %vm212_vm1, %v213_v2, 0  ;;  %v2410_v6 = vld [vmem:[%s3307_s1] sm:$0xff]   ;;  %2252 = vmatprep.mubr.msk.bf16.mxu0 %vm156_vm2, %v2411_v4  ;;  %2292 = vmatprep.mubr.msk.bf16.mxu1 %vm156_vm2, %v2412_v7  ;;  %v2413_v8 = vld [vmem:[%s3308_s0 + $0x8] sm:$0xff]   ;;  %v2414_v9 = vld [vmem:[%s3308_s0 + $0x98] sm:$0xff]  }
   0x3   :  { %v216_v5 = vand.u32 %v2409_v0, %v214_v3  ;;  %v2415_v10 = vld [vmem:[%s3308_s0 + $0x10] sm:$0xff]   ;;  %v2416_v11 = vld [vmem:[%s3308_s0 + $0xa0] sm:$0xff]   ;;  %v2417_v12 = vld [vmem:[%s3308_s0 + $0x18] sm:$0xff]  }
   0x4   :  { %v2418_v13 = vld [vmem:[%s3308_s0 + $0xa8] sm:$0xff]   ;;  %v2419_v14 = vld [vmem:[%s3308_s0 + $0x20] sm:$0xff]   ;;  %v2420_v15 = vld [vmem:[%s3308_s0 + $0xb0] sm:$0xff]  }
   0x5   :  { %2248 = vmatprep.subr.bf16.mxu0 %v216_v5  ;;  %2288 = vmatprep.subr.bf16.mxu1 %v216_v5  ;;  %v2421_v16 = vld [vmem:[%s3308_s0 + $0x28] sm:$0xff]   ;;  %v2422_v17 = vld [vmem:[%s3308_s0 + $0xb8] sm:$0xff]   ;;  %v2423_v18 = vld [vmem:[%s3308_s0 + $0x30] sm:$0xff]  }
   0x6   :  { %2249 = vmatpush3.bf16.msra.mxu0 %v216_v5  ;;  %2289 = vmatpush3.bf16.msra.mxu1 %v216_v5  ;;  %v2424_v19 = vld [vmem:[%s3308_s0 + $0xc0] sm:$0xff]   ;;  %v2425_v20 = vld [vmem:[%s3308_s0 + $0x38] sm:$0xff]   ;;  %v2426_v21 = vld [vmem:[%s3308_s0 + $0xc8] sm:$0xff]  }
   0x7   :  { %2250 = vmatprep.subr.bf16.mxu0 %v2410_v6  ;;  %2290 = vmatprep.subr.bf16.mxu1 %v2410_v6  ;;  %v2427_v22 = vld [vmem:[%s3308_s0 + $0x40] sm:$0xff]   ;;  %v2428_v23 = vld [vmem:[%s3308_s0 + $0xd0] sm:$0xff]   ;;  %v2429_v24 = vld [vmem:[%s3308_s0 + $0x48] sm:$0xff]  }
   0x8   :  { %v2430_v25 = vld [vmem:[%s3308_s0 + $0xd8] sm:$0xff]   ;;  %v2431_v26 = vld [vmem:[%s3308_s0 + $0x50] sm:$0xff]   ;;  %v2432_v27 = vld [vmem:[%s3308_s0 + $0xe0] sm:$0xff]  }
   0x9   :  { %v2433_v28 = vld [vmem:[%s3308_s0 + $0x58] sm:$0xff]   ;;  %v2434_v29 = vld [vmem:[%s3308_s0 + $0xe8] sm:$0xff]   ;;  %v2435_v30 = vld [vmem:[%s3308_s0 + $0x60] sm:$0xff]  }
   0xa   :  { %2251 = vmatpush3.bf16.msra.mxu0 %v2410_v6  ;;  %2291 = vmatpush3.bf16.msra.mxu1 %v2410_v6  ;;  %v2436_v31 = vld [vmem:[%s3308_s0 + $0xf0] sm:$0xff]   ;;  %v2437_v32 = vld [vmem:[%s3308_s0 + $0x68] sm:$0xff]   ;;  %v2438_v33 = vld [vmem:[%s3308_s0 + $0xf8] sm:$0xff]  }
   0xb   :  { %2328 = vmatprep.subr.bf16.mxu0 %v216_v5  ;;  %2368 = vmatprep.subr.bf16.mxu1 %v216_v5  ;;  %v2439_v34 = vld [vmem:[%s3308_s0 + $0x70] sm:$0xff]   ;;  %v2440_v35 = vld [vmem:[%s3308_s0 + $0x100] sm:$0xff]   ;;  %v2441_v36 = vld [vmem:[%s3308_s0 + $0x78] sm:$0xff]  }
   0xc   :  { %v2442_v37 = vld [vmem:[%s3308_s0 + $0x108] sm:$0xff]   ;;  %v2443_v38 = vld [vmem:[%s3308_s0 + $0x80] sm:$0xff]   ;;  %v2444_v39 = vld [vmem:[%s3308_s0 + $0x110] sm:$0xff]  }
   0xd   :  { %2253 = vmatmul.mubr.msk.bf16.vlgmr.msra.gmra.mxu0 %vm156_vm2, %v2413_v8  ;;  %2293 = vmatmul.mubr.msk.bf16.vlgmr.msra.gmra.mxu1 %vm156_vm2, %v2414_v9  ;;  %v2445_v40 = vld [vmem:[%s3308_s0 + $0x88] sm:$0xff]   ;;  %v2446_v41 = vld [vmem:[%s3308_s0 + $0x118] sm:$0xff]   ;;  %v2447_v42 = vld [vmem:[%s3308_s0 + $0x120] sm:$0xff]  }
   0xe   :  { %2329 = vmatpush3.bf16.msra.mxu0 %v216_v5  ;;  %2369 = vmatpush3.bf16.msra.mxu1 %v216_v5  ;;  %v2448_v43 = vld [vmem:[%s3308_s0 + $0x1b0] sm:$0xff]   ;;  %v2449_v44 = vld [vmem:[%s3308_s0 + $0x128] sm:$0xff]   ;;  %v2450_v45 = vld [vmem:[%s3308_s0 + $0x1b8] sm:$0xff]  }
   0xf   :  { %2256 = vmatprep.mubr.msk.bf16.mxu0 %vm156_vm2, %v2415_v10  ;;  %2296 = vmatprep.mubr.msk.bf16.mxu1 %vm156_vm2, %v2416_v11  ;;  %v2451_v46 = vld [vmem:[%s3308_s0 + $0x130] sm:$0xff]   ;;  %v2452_v47 = vld [vmem:[%s3308_s0 + $0x1c0] sm:$0xff]   ;;  %v2453_v48 = vld [vmem:[%s3308_s0 + $0x138] sm:$0xff]  }
  0x10   :  { %2330 = vmatprep.subr.bf16.mxu0 %v2410_v6  ;;  %2370 = vmatprep.subr.bf16.mxu1 %v2410_v6  ;;  %v2454_v49 = vld [vmem:[%s3308_s0 + $0x1c8] sm:$0xff]   ;;  %v2455_v50 = vld [vmem:[%s3308_s0 + $0x140] sm:$0xff]   ;;  %v2456_v51 = vld [vmem:[%s3308_s0 + $0x1d0] sm:$0xff]  }
  0x11   :  { %v2457_v52 = vld [vmem:[%s3308_s0 + $0x148] sm:$0xff]   ;;  %v2458_v53 = vld [vmem:[%s3308_s0 + $0x1d8] sm:$0xff]   ;;  %v2459_v54 = vld [vmem:[%s3308_s0 + $0x150] sm:$0xff]  }
  0x12   :  { %2331 = vmatpush3.bf16.msra.mxu0 %v2410_v6  ;;  %2371 = vmatpush3.bf16.msra.mxu1 %v2410_v6  ;;  %v2460_v55 = vld [vmem:[%s3308_s0 + $0x1e0] sm:$0xff]   ;;  %v2461_v56 = vld [vmem:[%s3308_s0 + $0x158] sm:$0xff]   ;;  %v2462_v57 = vld [vmem:[%s3308_s0 + $0x1e8] sm:$0xff]  }
  0x13   :  { %v2463_v58 = vld [vmem:[%s3308_s0 + $0x160] sm:$0xff]   ;;  %v2464_v59 = vld [vmem:[%s3308_s0 + $0x1f0] sm:$0xff]   ;;  %v2465_v60 = vld [vmem:[%s3308_s0 + $0x168] sm:$0xff]  }
  0x14   :  { %v2466_v61 = vld [vmem:[%s3308_s0 + $0x1f8] sm:$0xff]   ;;  %v2467_v62 = vld [vmem:[%s3308_s0 + $0x170] sm:$0xff]   ;;  %v2468_v63 = vld [vmem:[%s3308_s0 + $0x200] sm:$0xff]  }
  0x15   :  { %2257 = vmatmul.mubr.msk.bf16.gmra.mxu0 %vm156_vm2, %v2417_v12  ;;  %2297 = vmatmul.mubr.msk.bf16.gmra.mxu1 %vm156_vm2, %v2418_v13  ;;  %v2469_v0 = vld [vmem:[%s3308_s0 + $0x178] sm:$0xff]   ;;  %v2470_v1 = vld [vmem:[%s3308_s0 + $0x208] sm:$0xff]   ;;  %v2471_v2 = vld [vmem:[%s3308_s0 + $0x180] sm:$0xff]  }
  0x16   :  { %2260 = vmatprep.mubr.msk.bf16.mxu0 %vm156_vm2, %v2419_v14  ;;  %2300 = vmatprep.mubr.msk.bf16.mxu1 %vm156_vm2, %v2420_v15  ;;  %v2472_v3 = vld [vmem:[%s3308_s0 + $0x210] sm:$0xff]   ;;  %v2473_v4 = vld [vmem:[%s3308_s0 + $0x188] sm:$0xff]   ;;  %v2474_v5 = vld [vmem:[%s3308_s0 + $0x218] sm:$0xff]  }
  0x17   :  { %v2475_v6 = vld [vmem:[%s3308_s0 + $0x190] sm:$0xff]   ;;  %v2476_v7 = vld [vmem:[%s3308_s0 + $0x220] sm:$0xff]   ;;  %v2477_v8 = vld [vmem:[%s3308_s0 + $0x198] sm:$0xff]  }
  0x18   :  { %v2478_v9 = vld [vmem:[%s3308_s0 + $0x228] sm:$0xff]   ;;  %v2479_v10 = vld [vmem:[%s3308_s0 + $0x1a0] sm:$0xff]   ;;  %v2480_v11 = vld [vmem:[%s3308_s0 + $0x230] sm:$0xff]  }
  0x19   :  { %v2481_v12 = vld [vmem:[%s3308_s0 + $0x1a8] sm:$0xff]   ;;  %v2482_v13 = vld [vmem:[%s3308_s0 + $0x238] sm:$0xff]  }
  0x1d   :  { %2261 = vmatmul.mubr.msk.bf16.gmra.mxu0 %vm156_vm2, %v2421_v16  ;;  %2301 = vmatmul.mubr.msk.bf16.gmra.mxu1 %vm156_vm2, %v2422_v17 }
  0x1e   :  { %2264 = vmatprep.mubr.msk.bf16.mxu0 %vm156_vm2, %v2423_v18  ;;  %2304 = vmatprep.mubr.msk.bf16.mxu1 %vm156_vm2, %v2424_v19 }
  0x25   :  { %2265 = vmatmul.mubr.msk.bf16.gmra.mxu0 %vm156_vm2, %v2425_v20  ;;  %2305 = vmatmul.mubr.msk.bf16.gmra.mxu1 %vm156_vm2, %v2426_v21 }
  0x26   :  { %2268 = vmatprep.mubr.msk.bf16.mxu0 %vm156_vm2, %v2427_v22  ;;  %2308 = vmatprep.mubr.msk.bf16.mxu1 %vm156_vm2, %v2428_v23 }
  0x2d   :  { %2269 = vmatmul.mubr.msk.bf16.gmra.mxu0 %vm156_vm2, %v2429_v24  ;;  %2309 = vmatmul.mubr.msk.bf16.gmra.mxu1 %vm156_vm2, %v2430_v25 }
  0x2e   :  { %2272 = vmatprep.mubr.msk.bf16.mxu0 %vm156_vm2, %v2431_v26  ;;  %2312 = vmatprep.mubr.msk.bf16.mxu1 %vm156_vm2, %v2432_v27 }
  0x35   :  { %2273 = vmatmul.mubr.msk.bf16.gmra.mxu0 %vm156_vm2, %v2433_v28  ;;  %2313 = vmatmul.mubr.msk.bf16.gmra.mxu1 %vm156_vm2, %v2434_v29 }
  0x36   :  { %2276 = vmatprep.mubr.msk.bf16.mxu0 %vm156_vm2, %v2435_v30  ;;  %2316 = vmatprep.mubr.msk.bf16.mxu1 %vm156_vm2, %v2436_v31 }
  0x3d   :  { %2277 = vmatmul.mubr.msk.bf16.gmra.mxu0 %vm156_vm2, %v2437_v32  ;;  %2317 = vmatmul.mubr.msk.bf16.gmra.mxu1 %vm156_vm2, %v2438_v33 }
  0x3e   :  { %2280 = vmatprep.mubr.msk.bf16.mxu0 %vm156_vm2, %v2439_v34  ;;  %2320 = vmatprep.mubr.msk.bf16.mxu1 %vm156_vm2, %v2440_v35 }
  0x45   :  { %2281 = vmatmul.mubr.msk.bf16.gmra.mxu0 %vm156_vm2, %v2441_v36  ;;  %2321 = vmatmul.mubr.msk.bf16.gmra.mxu1 %vm156_vm2, %v2442_v37 }
  0x46   :  { %2284 = vmatprep.mubr.msk.bf16.mxu0 %vm156_vm2, %v2443_v38  ;;  %2324 = vmatprep.mubr.msk.bf16.mxu1 %vm156_vm2, %v2444_v39 }
  0x4d   :  { %2285 = vmatmul.mubr.msk.bf16.gmra.mxu0 %vm156_vm2, %v2445_v40  ;;  %2325 = vmatmul.mubr.msk.bf16.gmra.mxu1 %vm156_vm2, %v2446_v41 }
  0x4e   :  { %2332 = vmatprep.mubr.msk.bf16.mxu0 %vm156_vm2, %v2447_v42  ;;  %2372 = vmatprep.mubr.msk.bf16.mxu1 %vm156_vm2, %v2448_v43 }
  0x55   :  { %2333 = vmatmul.mubr.msk.bf16.vlgmr.msra.gmra.mxu0 %vm156_vm2, %v2449_v44  ;;  %2373 = vmatmul.mubr.msk.bf16.vlgmr.msra.gmra.mxu1 %vm156_vm2, %v2450_v45 }
  0x56   :  { %2336 = vmatprep.mubr.msk.bf16.mxu0 %vm156_vm2, %v2451_v46  ;;  %2376 = vmatprep.mubr.msk.bf16.mxu1 %vm156_vm2, %v2452_v47 }
  0x5d   :  { %2337 = vmatmul.mubr.msk.bf16.gmra.mxu0 %vm156_vm2, %v2453_v48  ;;  %2377 = vmatmul.mubr.msk.bf16.gmra.mxu1 %vm156_vm2, %v2454_v49 }
  0x5e   :  { %2340 = vmatprep.mubr.msk.bf16.mxu0 %vm156_vm2, %v2455_v50  ;;  %2380 = vmatprep.mubr.msk.bf16.mxu1 %vm156_vm2, %v2456_v51 }
  0x65   :  { %2341 = vmatmul.mubr.msk.bf16.gmra.mxu0 %vm156_vm2, %v2457_v52  ;;  %2381 = vmatmul.mubr.msk.bf16.gmra.mxu1 %vm156_vm2, %v2458_v53 }
  0x66   :  { %2344 = vmatprep.mubr.msk.bf16.mxu0 %vm156_vm2, %v2459_v54  ;;  %2384 = vmatprep.mubr.msk.bf16.mxu1 %vm156_vm2, %v2460_v55 }
  0x6d   :  { %2345 = vmatmul.mubr.msk.bf16.gmra.mxu0 %vm156_vm2, %v2461_v56  ;;  %2385 = vmatmul.mubr.msk.bf16.gmra.mxu1 %vm156_vm2, %v2462_v57 }
  0x6e   :  { %2348 = vmatprep.mubr.msk.bf16.mxu0 %vm156_vm2, %v2463_v58  ;;  %2388 = vmatprep.mubr.msk.bf16.mxu1 %vm156_vm2, %v2464_v59 }
  0x75   :  { %2349 = vmatmul.mubr.msk.bf16.gmra.mxu0 %vm156_vm2, %v2465_v60  ;;  %2389 = vmatmul.mubr.msk.bf16.gmra.mxu1 %vm156_vm2, %v2466_v61 }
  0x76   :  { %2352 = vmatprep.mubr.msk.bf16.mxu0 %vm156_vm2, %v2467_v62  ;;  %2392 = vmatprep.mubr.msk.bf16.mxu1 %vm156_vm2, %v2468_v63 }
  0x7d   :  { %2353 = vmatmul.mubr.msk.bf16.gmra.mxu0 %vm156_vm2, %v2469_v0  ;;  %2393 = vmatmul.mubr.msk.bf16.gmra.mxu1 %vm156_vm2, %v2470_v1 }
  0x7e   :  { %2356 = vmatprep.mubr.msk.bf16.mxu0 %vm156_vm2, %v2471_v2  ;;  %2396 = vmatprep.mubr.msk.bf16.mxu1 %vm156_vm2, %v2472_v3 }
  0x85   :  { %2357 = vmatmul.mubr.msk.bf16.gmra.mxu0 %vm156_vm2, %v2473_v4  ;;  %2397 = vmatmul.mubr.msk.bf16.gmra.mxu1 %vm156_vm2, %v2474_v5 }
  0x86   :  { %2360 = vmatprep.mubr.msk.bf16.mxu0 %vm156_vm2, %v2475_v6  ;;  %2400 = vmatprep.mubr.msk.bf16.mxu1 %vm156_vm2, %v2476_v7 }
  0x8d   :  { %2361 = vmatmul.mubr.msk.bf16.gmra.mxu0 %vm156_vm2, %v2477_v8  ;;  %2401 = vmatmul.mubr.msk.bf16.gmra.mxu1 %vm156_vm2, %v2478_v9 }
  0x8e   :  { %2364 = vmatprep.mubr.msk.bf16.mxu0 %vm156_vm2, %v2479_v10  ;;  %2404 = vmatprep.mubr.msk.bf16.mxu1 %vm156_vm2, %v2480_v11 }
  0x95   :  { %2365 = vmatmul.mubr.msk.bf16.gmra.mxu0 %vm156_vm2, %v2481_v12  ;;  %2405 = vmatmul.mubr.msk.bf16.gmra.mxu1 %vm156_vm2, %v2482_v13 }
  0xcd   :  { %v2798_v14 = vpop.f32.mrf.mxu0  ;;  %v2800_v15 = vpop.f32.mrf.mxu1 }
  0xcf   :  { %v2804_v17 = vpop.f32.mrf.mxu0  ;;  %v2806_v18 = vpop.f32.mrf.mxu1 }
  0xd1   :  { %v2810_v20 = vpop.f32.mrf.mxu0  ;;  %v2812_v21 = vpop.f32.mrf.mxu1 }
  0xd3   :  { %v2816_v23 = vpop.f32.mrf.mxu0  ;;  %v2818_v24 = vpop.f32.mrf.mxu1 }
  0xd5   :  { %v2822_v26 = vpop.f32.mrf.mxu0  ;;  %v2824_v27 = vpop.f32.mrf.mxu1 }
  0xd7   :  { %v2828_v29 = vpop.f32.mrf.mxu0  ;;  %v2830_v30 = vpop.f32.mrf.mxu1 }
  0xd9   :  { %v2834_v32 = vpop.f32.mrf.mxu0  ;;  %v2836_v33 = vpop.f32.mrf.mxu1 }
  0xdb   :  { %v2840_v35 = vpop.f32.mrf.mxu0  ;;  %v2842_v36 = vpop.f32.mrf.mxu1 }
  0xdd   :  { %v2846_v38 = vpop.f32.mrf.mxu0  ;;  %v2848_v39 = vpop.f32.mrf.mxu1 }
  0xdf   :  { %v2852_v41 = vpop.f32.mrf.mxu0  ;;  %v2854_v42 = vpop.f32.mrf.mxu1 }
  0xe1   :  { %v2858_v44 = vpop.f32.mrf.mxu0  ;;  %v2860_v45 = vpop.f32.mrf.mxu1 }
  0xe3   :  { %v2864_v47 = vpop.f32.mrf.mxu0  ;;  %v2866_v48 = vpop.f32.mrf.mxu1 }
  0xe5   :  { %v2870_v50 = vpop.f32.mrf.mxu0  ;;  %v2872_v51 = vpop.f32.mrf.mxu1 }
  0xe7   :  { %v2876_v53 = vpop.f32.mrf.mxu0  ;;  %v2878_v54 = vpop.f32.mrf.mxu1 }
  0xe9   :  { %v2882_v56 = vpop.f32.mrf.mxu0  ;;  %v2884_v57 = vpop.f32.mrf.mxu1 }
  0xeb   :  { %v2888_v59 = vpop.f32.mrf.mxu0  ;;  %v2890_v60 = vpop.f32.mrf.mxu1 }
  0xed   :  { %v2894_v62 = vpop.f32.mrf.mxu0  ;;  %v2896_v63 = vpop.f32.mrf.mxu1 }
  0xef   :  { %v2900_v1 = vpop.f32.mrf.mxu0  ;;  %v2902_v2 = vpop.f32.mrf.mxu1 }
  0xf1   :  { %v2906_v4 = vpop.f32.mrf.mxu0  ;;  %v2908_v5 = vpop.f32.mrf.mxu1 }
  0xf3   :  { %v2912_v7 = vpop.f32.mrf.mxu0  ;;  %v2914_v8 = vpop.f32.mrf.mxu1 }
  0xf5   :  { %v2918_v10 = vpop.f32.mrf.mxu0  ;;  %v2920_v11 = vpop.f32.mrf.mxu1 }
  0xf7   :  { %v2924_v13 = vpop.f32.mrf.mxu0  ;;  %v2926_v3 = vpop.f32.mrf.mxu1 }
  0xf9   :  { %v2930_v0 = vpop.f32.mrf.mxu0  ;;  %v2932_v61 = vpop.f32.mrf.mxu1 }
  0xfb   :  { %v2936_v58 = vpop.f32.mrf.mxu0  ;;  %v2938_v55 = vpop.f32.mrf.mxu1 }
  0xfc   :  { %3336 = vst [vmem:[#allocation2_spill] sm:$0xff] %v2938_v55 }
  0xfd   :  { %v2942_v52 = vpop.f32.mrf.mxu0  ;;  %v2944_v49 = vpop.f32.mrf.mxu1 }
  0xfe   :  { %3337 = vst [vmem:[#allocation3_spill] sm:$0xff] %v2942_v52  ;;  %3338 = vst [vmem:[#allocation4_spill] sm:$0xff] %v2944_v49 }
  0xff   :  { %v2948_v46 = vpop.f32.mrf.mxu0  ;;  %v2950_v43 = vpop.f32.mrf.mxu1 }
 0x100   :  { %3339 = vst [vmem:[#allocation5_spill] sm:$0xff] %v2948_v46  ;;  %3340 = vst [vmem:[#allocation6_spill] sm:$0xff] %v2950_v43 }
 0x101   :  { %v2954_v40 = vpop.f32.mrf.mxu0  ;;  %v2956_v37 = vpop.f32.mrf.mxu1 }
 0x102   :  { %3341 = vst [vmem:[#allocation7_spill] sm:$0xff] %v2954_v40  ;;  %3342 = vst [vmem:[#allocation8_spill] sm:$0xff] %v2956_v37  ;;  %v3361_v40 = vmax.f32 %v2798_v14, %v2800_v15  ;;  %v3363_v14 = vmax.f32 %v2810_v20, %v2812_v21  ;;  %v3365_v20 = vmax.f32 %v2822_v26, %v2824_v27 }
 0x103   :  { %v2960_v34 = vpop.f32.mrf.mxu0  ;;  %v2962_v31 = vpop.f32.mrf.mxu1 }
 0x104   :  { %3343 = vst [vmem:[#allocation9_spill] sm:$0xff] %v2960_v34  ;;  %3344 = vst [vmem:[#allocation10_spill] sm:$0xff] %v2962_v31 }
 0x105   :  { %v2966_v28 = vpop.f32.mrf.mxu0  ;;  %v2968_v25 = vpop.f32.mrf.mxu1 }
 0x106   :  { %3345 = vst [vmem:[#allocation11_spill] sm:$0xff] %v2966_v28  ;;  %3346 = vst [vmem:[#allocation12_spill] sm:$0xff] %v2968_v25 }
 0x107   :  { %v2972_v22 = vpop.f32.mrf.mxu0  ;;  %v2974_v19 = vpop.f32.mrf.mxu1 }
 0x108   :  { %3347 = vst [vmem:[#allocation13_spill] sm:$0xff] %v2972_v22  ;;  %3348 = vst [vmem:[#allocation14_spill] sm:$0xff] %v2974_v19 }
 0x109   :  { %v2978_v16 = vpop.f32.mrf.mxu0  ;;  %v2980_v37 = vpop.f32.mrf.mxu1 }
 0x10a   :  { %3349 = vst [vmem:[#allocation15_spill] sm:$0xff] %v2978_v16  ;;  %3350 = vst [vmem:[#allocation16_spill] sm:$0xff] %v2980_v37 }
 0x10b   :  { %v2984_v31 = vpop.f32.mrf.mxu0  ;;  %v2986_v34 = vpop.f32.mrf.mxu1 }
 0x10c   :  { %3351 = vst [vmem:[#allocation17_spill] sm:$0xff] %v2984_v31  ;;  %3352 = vst [vmem:[#allocation18_spill] sm:$0xff] %v2986_v34 }
 0x10d   :  { %v2990_v25 = vpop.f32.mrf.mxu0  ;;  %v2992_v28 = vpop.f32.mrf.mxu1 }
 0x10e   :  { %3353 = vst [vmem:[#allocation19_spill] sm:$0xff] %v2990_v25  ;;  %3354 = vst [vmem:[#allocation20_spill] sm:$0xff] %v2992_v28 }
 0x10f   :  { %v2996_v19 = vpop.f32.mrf.mxu0  ;;  %v2998_v22 = vpop.f32.mrf.mxu1 }
 0x110   :  { %3355 = vst [vmem:[#allocation21_spill] sm:$0xff] %v2996_v19  ;;  %3356 = vst [vmem:[#allocation22_spill] sm:$0xff] %v2998_v22  ;;  %v3020_v22 = vld [vmem:[%s3309_s2] ss:$0 sm:$0xff] }
 0x111   :  { %v3002_v37 = vpop.f32.mrf.mxu0  ;;  %v3004_v16 = vpop.f32.mrf.mxu1 }
 0x112   :  { %3357 = vst [vmem:[#allocation23_spill] sm:$0xff] %v3002_v37  ;;  %3358 = vst [vmem:[#allocation24_spill] sm:$0xff] %v3004_v16  ;;  %v3362_v37 = vmax.f32 %v2804_v17, %v2806_v18 }
 0x113   :  { %v3008_v34 = vpop.f32.mrf.mxu0  ;;  %v3010_v31 = vpop.f32.mrf.mxu1 }
 0x114   :  { %3359 = vst [vmem:[#allocation25_spill] sm:$0xff] %v3008_v34  ;;  %3360 = vst [vmem:[#allocation26_spill] sm:$0xff] %v3010_v31 }
 0x115   :  { %v2334_v28 = vpop.f32.mrf.mxu0  ;;  %v2374_v25 = vpop.f32.mrf.mxu1 }
 0x116   :  { %v1149_v6 = vmax.f32 %v3361_v40, %v2334_v28 }
 0x117   :  { %v1004_v19 = vpop.f32.mrf.mxu0  ;;  %v1398_v9 = vpop.f32.mrf.mxu1 }
 0x118   :  { %v1543_v16 = vmax.f32 %v1149_v6, %v2374_v25  ;;  %v1147_v43 = vmax.f32 %v3362_v37, %v1004_v19  ;;  %v3364_v25 = vmax.f32 %v2816_v23, %v2818_v24 }
 0x119   :  { %v2335_v46 = vpop.f32.mrf.mxu0  ;;  %v2375_v12 = vpop.f32.mrf.mxu1 }
 0x11a   :  { %v1586_v31 = vadd.f32 %v3020_v22, %v1543_v16  ;;  %v1541_v34 = vmax.f32 %v1147_v43, %v1398_v9  ;;  %v1150_v15 = vmax.f32 %v3363_v14, %v2335_v46 }
 0x11b   :  { %v1007_v28 = vpop.f32.mrf.mxu0  ;;  %v1401_v40 = vpop.f32.mrf.mxu1 }
 0x11c   :  { %v1622_v49 = vmax.f32 %v1586_v31, 0.0  ;;  %v1584_v52 = vadd.f32 %v3020_v22, %v1541_v34  ;;  %v1544_v55 = vmax.f32 %v1150_v15, %v2375_v12  ;;  %v1148_v17 = vmax.f32 %v3364_v25, %v1007_v28 }
 0x11d   :  { %v2338_v18 = vpop.f32.mrf.mxu0  ;;  %v2378_v19 = vpop.f32.mrf.mxu1  ;;  %v3367_v15 = vmax.f32 %v2834_v32, %v2836_v33 }
 0x11e   :  { %v2134_v37 = vpack.c.bf16 %v1622_v49, %v1622_v49  ;;  %v1620_v16 = vmax.f32 %v1584_v52, 0.0  ;;  %v1587_v43 = vadd.f32 %v3020_v22, %v1544_v55  ;;  %v1542_v6 = vmax.f32 %v1148_v17, %v1401_v40 }
 0x11f   :  { %v1153_v21 = vmax.f32 %v3365_v20, %v2338_v18  ;;  %v1020_v31 = vpop.f32.mrf.mxu0  ;;  %v1414_v46 = vpop.f32.mrf.mxu1  ;;  %v3366_v49 = vmax.f32 %v2828_v29, %v2830_v30 }
 0x120   :  { %1803 = vst.msk [vmem:[%s3310_s3 + $0x8] sm:$0xf] %vm1800_vm3, %v2134_v37  ;;  %v2132_v23 = vpack.c.bf16 %v1620_v16, %v1620_v16  ;;  %v1623_v24 = vmax.f32 %v1587_v43, 0.0  ;;  %v1585_v34 = vadd.f32 %v3020_v22, %v1542_v6 }
 0x121   :  { %v1151_v52 = vmax.f32 %v3366_v49, %v1020_v31  ;;  %v1547_v55 = vmax.f32 %v1153_v21, %v2378_v19  ;;  %v2339_v9 = vpop.f32.mrf.mxu0  ;;  %v2379_v12 = vpop.f32.mrf.mxu1  ;;  %v3368_v19 = vmax.f32 %v2840_v35, %v2842_v36  ;;  %v3369_v21 = vmax.f32 %v2846_v38, %v2848_v39 }
 0x122   :  { %1801 = vst.msk [vmem:[%s3310_s3] sm:$0xf] %vm1800_vm3, %v2132_v23  ;;  %v2135_v26 = vpack.c.bf16 %v1623_v24, %v1623_v24  ;;  %v1621_v27 = vmax.f32 %v1585_v34, 0.0  ;;  %v1154_v28 = vmax.f32 %v3367_v15, %v2339_v9 }
 0x123   :  { %v1545_v14 = vmax.f32 %v1151_v52, %v1414_v46  ;;  %v1590_v40 = vadd.f32 %v3020_v22, %v1547_v55  ;;  %v1023_v25 = vpop.f32.mrf.mxu0  ;;  %v1417_v29 = vpop.f32.mrf.mxu1  ;;  %v3370_v52 = vmax.f32 %v2852_v41, %v2854_v42 }
 0x124   :  { %1804 = vst.msk [vmem:[%s3310_s3 + $0xc] sm:$0xf] %vm1800_vm3, %v2135_v26  ;;  %v2133_v30 = vpack.c.bf16 %v1621_v27, %v1621_v27  ;;  %v1548_v18 = vmax.f32 %v1154_v28, %v2379_v12  ;;  %v1152_v37 = vmax.f32 %v3368_v19, %v1023_v25  ;;  %v3371_v27 = vmax.f32 %v2858_v44, %v2860_v45 }
 0x125   :  { %v1588_v17 = vadd.f32 %v3020_v22, %v1545_v14  ;;  %v1626_v16 = vmax.f32 %v1590_v40, 0.0  ;;  %v2342_v32 = vpop.f32.mrf.mxu0  ;;  %v2382_v33 = vpop.f32.mrf.mxu1 }
 0x126   :  { %1802 = vst.msk [vmem:[%s3310_s3 + $0x4] sm:$0xf] %vm1800_vm3, %v2133_v30  ;;  %v1591_v6 = vadd.f32 %v3020_v22, %v1548_v18  ;;  %v1546_v20 = vmax.f32 %v1152_v37, %v1417_v29  ;;  %v1157_v31 = vmax.f32 %v3369_v21, %v2342_v32  ;;  %v3372_v29 = vmax.f32 %v2864_v47, %v2866_v48 }
 0x127   :  { %v1624_v43 = vmax.f32 %v1588_v17, 0.0  ;;  %v2138_v46 = vpack.c.bf16 %v1626_v16, %v1626_v16  ;;  %v1036_v23 = vpop.f32.mrf.mxu0  ;;  %v1430_v35 = vpop.f32.mrf.mxu1  ;;  %v3373_v16 = vmax.f32 %v2870_v50, %v2872_v51  ;;  %v3374_v21 = vmax.f32 %v2876_v53, %v2878_v54 }
 0x128   :  { %v1627_v24 = vmax.f32 %v1591_v6, 0.0  ;;  %v1589_v34 = vadd.f32 %v3020_v22, %v1546_v20  ;;  %v1551_v49 = vmax.f32 %v1157_v31, %v2382_v33  ;;  %v1155_v55 = vmax.f32 %v3370_v52, %v1036_v23 }
 0x129   :  { %v2136_v36 = vpack.c.bf16 %v1624_v43, %v1624_v43  ;;  %1807 = vst.msk [vmem:[%s3310_s3 + $0x18] sm:$0xf] %vm1800_vm3, %v2138_v46  ;;  %v2343_v9 = vpop.f32.mrf.mxu0  ;;  %v2383_v38 = vpop.f32.mrf.mxu1 }
 0x12a   :  { %v2139_v39 = vpack.c.bf16 %v1627_v24, %v1627_v24  ;;  %v1625_v12 = vmax.f32 %v1589_v34, 0.0  ;;  %v1594_v26 = vadd.f32 %v3020_v22, %v1551_v49  ;;  %v1158_v14 = vmax.f32 %v3371_v27, %v2343_v9 }
 0x12b   :  { %1805 = vst.msk [vmem:[%s3310_s3 + $0x10] sm:$0xf] %vm1800_vm3, %v2136_v36  ;;  %v1549_v15 = vmax.f32 %v1155_v55, %v1430_v35  ;;  %v1039_v28 = vpop.f32.mrf.mxu0  ;;  %v1433_v40 = vpop.f32.mrf.mxu1  ;;  %v3375_v34 = vmax.f32 %v2882_v56, %v2884_v57 }
 0x12c   :  { %1808 = vst.msk [vmem:[%s3310_s3 + $0x1c] sm:$0xf] %vm1800_vm3, %v2139_v39  ;;  %v2137_v41 = vpack.c.bf16 %v1625_v12, %v1625_v12  ;;  %v1630_v42 = vmax.f32 %v1594_v26, 0.0  ;;  %v1552_v25 = vmax.f32 %v1158_v14, %v2383_v38  ;;  %v1156_v30 = vmax.f32 %v3372_v29, %v1039_v28 }
 0x12d   :  { %v1592_v17 = vadd.f32 %v3020_v22, %v1549_v15  ;;  %v2346_v18 = vpop.f32.mrf.mxu0  ;;  %v2386_v44 = vpop.f32.mrf.mxu1  ;;  %v3376_v38 = vmax.f32 %v2888_v59, %v2890_v60  ;;  %v3377_v15 = vmax.f32 %v2894_v62, %v2896_v63  ;;  %v3378_v29 = vmax.f32 %v2900_v1, %v2902_v2 }
 0x12e   :  { %1806 = vst.msk [vmem:[%s3310_s3 + $0x14] sm:$0xf] %vm1800_vm3, %v2137_v41  ;;  %v2142_v45 = vpack.c.bf16 %v1630_v42, %v1630_v42  ;;  %v1595_v19 = vadd.f32 %v3020_v22, %v1552_v25  ;;  %v1550_v37 = vmax.f32 %v1156_v30, %v1433_v40  ;;  %v1161_v32 = vmax.f32 %v3373_v16, %v2346_v18 }
 0x12f   :  { %v1628_v33 = vmax.f32 %v1592_v17, 0.0  ;;  %v1052_v47 = vpop.f32.mrf.mxu0  ;;  %v1446_v48 = vpop.f32.mrf.mxu1 }
 0x130   :  { %1811 = vst.msk [vmem:[%s3310_s3 + $0x28] sm:$0xf] %vm1800_vm3, %v2142_v45  ;;  %v1631_v43 = vmax.f32 %v1595_v19, 0.0  ;;  %v1593_v6 = vadd.f32 %v3020_v22, %v1550_v37  ;;  %v1555_v20 = vmax.f32 %v1161_v32, %v2386_v44  ;;  %v1159_v31 = vmax.f32 %v3374_v21, %v1052_v47 }
 0x131   :  { %v2140_v46 = vpack.c.bf16 %v1628_v33, %v1628_v33  ;;  %v2347_v23 = vpop.f32.mrf.mxu0  ;;  %v2387_v50 = vpop.f32.mrf.mxu1  ;;  %v3379_v19 = vmax.f32 %v2906_v4, %v2908_v5 }
 0x132   :  { %v2143_v51 = vpack.c.bf16 %v1631_v43, %v1631_v43  ;;  %v1629_v35 = vmax.f32 %v1593_v6, 0.0  ;;  %v1598_v36 = vadd.f32 %v3020_v22, %v1555_v20  ;;  %v1553_v24 = vmax.f32 %v1159_v31, %v1446_v48 }
 0x133   :  { %1809 = vst.msk [vmem:[%s3310_s3 + $0x20] sm:$0xf] %vm1800_vm3, %v2140_v46  ;;  %v1162_v49 = vmax.f32 %v3375_v34, %v2347_v23  ;;  %v1055_v52 = vpop.f32.mrf.mxu0  ;;  %v1449_v53 = vpop.f32.mrf.mxu1  ;;  %v3380_v43 = vmax.f32 %v2912_v7, %v2914_v8  ;;  %v3381_v46 = vmax.f32 %v2918_v10, %v2920_v11 }
 0x134   :  { %1812 = vst.msk [vmem:[%s3310_s3 + $0x2c] sm:$0xf] %vm1800_vm3, %v2143_v51  ;;  %v2141_v54 = vpack.c.bf16 %v1629_v35, %v1629_v35  ;;  %v1634_v55 = vmax.f32 %v1598_v36, 0.0  ;;  %v1596_v9 = vadd.f32 %v3020_v22, %v1553_v24  ;;  %v1160_v39 = vmax.f32 %v3376_v38, %v1055_v52 }
 0x135   :  { %v1556_v12 = vmax.f32 %v1162_v49, %v2387_v50  ;;  %v2350_v26 = vpop.f32.mrf.mxu0  ;;  %v2390_v27 = vpop.f32.mrf.mxu1  ;;  %v3382_v24 = vmax.f32 %v2924_v13, %v2926_v3 }
 0x136   :  { %1810 = vst.msk [vmem:[%s3310_s3 + $0x24] sm:$0xf] %vm1800_vm3, %v2141_v54  ;;  %v2146_v56 = vpack.c.bf16 %v1634_v55, %v1634_v55  ;;  %v1632_v57 = vmax.f32 %v1596_v9, 0.0  ;;  %v1554_v14 = vmax.f32 %v1160_v39, %v1449_v53  ;;  %v1165_v28 = vmax.f32 %v3377_v15, %v2350_v26 }
 0x137   :  { %v1599_v40 = vadd.f32 %v3020_v22, %v1556_v12  ;;  %v1068_v41 = vpop.f32.mrf.mxu0  ;;  %v1462_v59 = vpop.f32.mrf.mxu1  ;;  %v3383_v55 = vmax.f32 %v2930_v0, %v2932_v61 }
 0x138   :  { %1815 = vst.msk [vmem:[%s3310_s3 + $0x38] sm:$0xf] %vm1800_vm3, %v2146_v56  ;;  %v2144_v60 = vpack.c.bf16 %v1632_v57, %v1632_v57  ;;  %v1597_v42 = vadd.f32 %v3020_v22, %v1554_v14  ;;  %v1559_v25 = vmax.f32 %v1165_v28, %v2390_v27  ;;  %v1163_v30 = vmax.f32 %v3378_v29, %v1068_v41  ;;  %v3384_v27 = vld [vmem:[#allocation2_spill] sm:$0xff] }
 0x139   :  { %v1635_v17 = vmax.f32 %v1599_v40, 0.0  ;;  %v2351_v62 = vpop.f32.mrf.mxu0  ;;  %v2391_v63 = vpop.f32.mrf.mxu1  ;;  %v3385_v56 = vmax.f32 %v2936_v58, %v3384_v27 }
 0x13a   :  { %1813 = vst.msk [vmem:[%s3310_s3 + $0x30] sm:$0xf] %vm1800_vm3, %v2144_v60  ;;  %v1633_v18 = vmax.f32 %v1597_v42, 0.0  ;;  %v1602_v44 = vadd.f32 %v3020_v22, %v1559_v25  ;;  %v1557_v45 = vmax.f32 %v1163_v30, %v1462_v59  ;;  %v1166_v37 = vmax.f32 %v3379_v19, %v2351_v62  ;;  %v3386_v59 = vld [vmem:[#allocation3_spill] sm:$0xff]  ;;  %v3387_v60 = vld [vmem:[#allocation4_spill] sm:$0xff] }
 0x13b   :  { %v2147_v16 = vpack.c.bf16 %v1635_v17, %v1635_v17  ;;  %v1071_v32 = vpop.f32.mrf.mxu0  ;;  %v1465_v1 = vpop.f32.mrf.mxu1  ;;  %v3388_v42 = vmax.f32 %v3386_v59, %v3387_v60 }
 0x13c   :  { %v2145_v2 = vpack.c.bf16 %v1633_v18, %v1633_v18  ;;  %v1638_v33 = vmax.f32 %v1602_v44, 0.0  ;;  %v1600_v47 = vadd.f32 %v3020_v22, %v1557_v45  ;;  %v1560_v48 = vmax.f32 %v1166_v37, %v2391_v63  ;;  %v3389_v63 = vld [vmem:[#allocation5_spill] sm:$0xff]  ;;  %v3390_v18 = vld [vmem:[#allocation6_spill] sm:$0xff] }
 0x13d   :  { %1816 = vst.msk [vmem:[%s3310_s3 + $0x3c] sm:$0xf] %vm1800_vm3, %v2147_v16  ;;  %v1164_v6 = vmax.f32 %v3380_v43, %v1071_v32  ;;  %v2354_v20 = vpop.f32.mrf.mxu0  ;;  %v2394_v4 = vpop.f32.mrf.mxu1  ;;  %v3391_v44 = vmax.f32 %v3389_v63, %v3390_v18 }
 0x13e   :  { %1814 = vst.msk [vmem:[%s3310_s3 + $0x34] sm:$0xf] %vm1800_vm3, %v2145_v2  ;;  %v2150_v5 = vpack.c.bf16 %v1638_v33, %v1638_v33  ;;  %v1636_v21 = vmax.f32 %v1600_v47, 0.0  ;;  %v1603_v31 = vadd.f32 %v3020_v22, %v1560_v48  ;;  %v1169_v23 = vmax.f32 %v3381_v46, %v2354_v20  ;;  %v3392_v33 = vld [vmem:[#allocation7_spill] sm:$0xff]  ;;  %v3393_v47 = vld [vmem:[#allocation8_spill] sm:$0xff]  ;;  %v3395_v46 = vld [vmem:[#allocation9_spill] sm:$0xff] }
 0x13f   :  { %v1558_v50 = vmax.f32 %v1164_v6, %v1465_v1  ;;  %v1084_v51 = vpop.f32.mrf.mxu0  ;;  %v1478_v35 = vpop.f32.mrf.mxu1  ;;  %v3394_v48 = vmax.f32 %v3392_v33, %v3393_v47 }
 0x140   :  { %1819 = vst.msk [vmem:[%s3310_s3 + $0x48] sm:$0xf] %vm1800_vm3, %v2150_v5  ;;  %v2148_v7 = vpack.c.bf16 %v1636_v21, %v1636_v21  ;;  %v1639_v8 = vmax.f32 %v1603_v31, 0.0  ;;  %v1563_v36 = vmax.f32 %v1169_v23, %v2394_v4  ;;  %v1167_v34 = vmax.f32 %v3382_v24, %v1084_v51  ;;  %v3396_v23 = vld [vmem:[#allocation10_spill] sm:$0xff] }
 0x141   :  { %v1601_v49 = vadd.f32 %v3020_v22, %v1558_v50  ;;  %v2355_v52 = vpop.f32.mrf.mxu0  ;;  %v2395_v10 = vpop.f32.mrf.mxu1  ;;  %v3397_v50 = vmax.f32 %v3395_v46, %v3396_v23 }
 0x142   :  { %1817 = vst.msk [vmem:[%s3310_s3 + $0x40] sm:$0xf] %vm1800_vm3, %v2148_v7  ;;  %v2151_v11 = vpack.c.bf16 %v1639_v8, %v1639_v8  ;;  %v1606_v53 = vadd.f32 %v3020_v22, %v1563_v36  ;;  %v1561_v54 = vmax.f32 %v1167_v34, %v1478_v35  ;;  %v1170_v9 = vmax.f32 %v3383_v55, %v2355_v52  ;;  %v3399_v52 = vld [vmem:[#allocation12_spill] sm:$0xff] }
 0x143   :  { %v1637_v38 = vmax.f32 %v1601_v49, 0.0  ;;  %v1087_v3 = vpop.f32.mrf.mxu0  ;;  %v1481_v13 = vpop.f32.mrf.mxu1  ;;  %v3398_v49 = vld [vmem:[#allocation11_spill] sm:$0xff] }
 0x144   :  { %1820 = vst.msk [vmem:[%s3310_s3 + $0x4c] sm:$0xf] %vm1800_vm3, %v2151_v11  ;;  %v1642_v39 = vmax.f32 %v1606_v53, 0.0  ;;  %v1604_v12 = vadd.f32 %v3020_v22, %v1561_v54  ;;  %v1564_v26 = vmax.f32 %v1170_v9, %v2395_v10  ;;  %v1168_v57 = vmax.f32 %v3385_v56, %v1087_v3 }
 0x145   :  { %v2149_v14 = vpack.c.bf16 %v1637_v38, %v1637_v38  ;;  %v2358_v15 = vpop.f32.mrf.mxu0  ;;  %v2398_v61 = vpop.f32.mrf.mxu1  ;;  %v3400_v10 = vmax.f32 %v3398_v49, %v3399_v52 }
 0x146   :  { %v2154_v0 = vpack.c.bf16 %v1642_v39, %v1642_v39  ;;  %v1640_v28 = vmax.f32 %v1604_v12, 0.0  ;;  %v1607_v40 = vadd.f32 %v3020_v22, %v1564_v26  ;;  %v1562_v41 = vmax.f32 %v1168_v57, %v1481_v13  ;;  %v3401_v39 = vld [vmem:[#allocation13_spill] sm:$0xff]  ;;  %v3402_v12 = vld [vmem:[#allocation14_spill] sm:$0xff] }
 0x147   :  { %1818 = vst.msk [vmem:[%s3310_s3 + $0x44] sm:$0xf] %vm1800_vm3, %v2149_v14  ;;  %v1173_v25 = vmax.f32 %v3388_v42, %v2358_v15  ;;  %v1100_v29 = vpop.f32.mrf.mxu0  ;;  %v1494_v58 = vpop.f32.mrf.mxu1  ;;  %v3403_v26 = vmax.f32 %v3401_v39, %v3402_v12 }
 0x148   :  { %1823 = vst.msk [vmem:[%s3310_s3 + $0x58] sm:$0xf] %vm1800_vm3, %v2154_v0  ;;  %v2152_v30 = vpack.c.bf16 %v1640_v28, %v1640_v28  ;;  %v1643_v17 = vmax.f32 %v1607_v40, 0.0  ;;  %v1605_v62 = vadd.f32 %v3020_v22, %v1562_v41  ;;  %v1171_v45 = vmax.f32 %v3391_v44, %v1100_v29  ;;  %v3404_v0 = vld [vmem:[#allocation15_spill] sm:$0xff]  ;;  %v3405_v28 = vld [vmem:[#allocation16_spill] sm:$0xff] }
 0x149   :  { %v1567_v19 = vmax.f32 %v1173_v25, %v2398_v61  ;;  %v2359_v37 = vpop.f32.mrf.mxu0  ;;  %v2399_v16 = vpop.f32.mrf.mxu1  ;;  %v3406_v40 = vmax.f32 %v3404_v0, %v3405_v28 }
 0x14a   :  { %1821 = vst.msk [vmem:[%s3310_s3 + $0x50] sm:$0xf] %vm1800_vm3, %v2152_v30  ;;  %v2155_v32 = vpack.c.bf16 %v1643_v17, %v1643_v17  ;;  %v1641_v1 = vmax.f32 %v1605_v62, 0.0  ;;  %v1565_v2 = vmax.f32 %v1171_v45, %v1494_v58  ;;  %v1174_v43 = vmax.f32 %v3394_v48, %v2359_v37  ;;  %v3407_v30 = vld [vmem:[#allocation17_spill] sm:$0xff]  ;;  %v3408_v17 = vld [vmem:[#allocation18_spill] sm:$0xff] }
 0x14b   :  { %v1610_v6 = vadd.f32 %v3020_v22, %v1567_v19  ;;  %v1103_v20 = vpop.f32.mrf.mxu0  ;;  %v1497_v4 = vpop.f32.mrf.mxu1  ;;  %v3409_v62 = vmax.f32 %v3407_v30, %v3408_v17 }
 0x14c   :  { %1824 = vst.msk [vmem:[%s3310_s3 + $0x5c] sm:$0xf] %vm1800_vm3, %v2155_v32  ;;  %v2153_v5 = vpack.c.bf16 %v1641_v1, %v1641_v1  ;;  %v1608_v21 = vadd.f32 %v3020_v22, %v1565_v2  ;;  %v1568_v31 = vmax.f32 %v1174_v43, %v2399_v16  ;;  %v1172_v51 = vmax.f32 %v3397_v50, %v1103_v20  ;;  %v3410_v32 = vld [vmem:[#allocation19_spill] sm:$0xff]  ;;  %v3411_v1 = vld [vmem:[#allocation20_spill] sm:$0xff] }
 0x14d   :  { %v1646_v35 = vmax.f32 %v1610_v6, 0.0  ;;  %v2362_v7 = vpop.f32.mrf.mxu0  ;;  %v2402_v8 = vpop.f32.mrf.mxu1  ;;  %v3412_v2 = vmax.f32 %v3410_v32, %v3411_v1 }
 0x14e   :  { %1822 = vst.msk [vmem:[%s3310_s3 + $0x54] sm:$0xf] %vm1800_vm3, %v2153_v5  ;;  %v1644_v36 = vmax.f32 %v1608_v21, 0.0  ;;  %v1611_v24 = vadd.f32 %v3020_v22, %v1568_v31  ;;  %v1566_v34 = vmax.f32 %v1172_v51, %v1497_v4  ;;  %v1177_v11 = vmax.f32 %v3400_v10, %v2362_v7  ;;  %v3413_v5 = vld [vmem:[#allocation21_spill] sm:$0xff]  ;;  %v3414_v21 = vld [vmem:[#allocation22_spill] sm:$0xff] }
 0x14f   :  { %v2158_v53 = vpack.c.bf16 %v1646_v35, %v1646_v35  ;;  %v1116_v54 = vpop.f32.mrf.mxu0  ;;  %v1510_v55 = vpop.f32.mrf.mxu1  ;;  %v3415_v31 = vmax.f32 %v3413_v5, %v3414_v21 }
 0x150   :  { %v2156_v9 = vpack.c.bf16 %v1644_v36, %v1644_v36  ;;  %v1647_v38 = vmax.f32 %v1611_v24, 0.0  ;;  %v1609_v3 = vadd.f32 %v3020_v22, %v1566_v34  ;;  %v1571_v13 = vmax.f32 %v1177_v11, %v2402_v8  ;;  %v3416_v24 = vld [vmem:[#allocation23_spill] sm:$0xff]  ;;  %v3417_v34 = vld [vmem:[#allocation24_spill] sm:$0xff] }
 0x151   :  { %1827 = vst.msk [vmem:[%s3310_s3 + $0x68] sm:$0xf] %vm1800_vm3, %v2158_v53  ;;  %v1175_v27 = vmax.f32 %v3403_v26, %v1116_v54  ;;  %v2363_v56 = vpop.f32.mrf.mxu0  ;;  %v2403_v57 = vpop.f32.mrf.mxu1  ;;  %v3418_v49 = vmax.f32 %v3416_v24, %v3417_v34 }
 0x152   :  { %1825 = vst.msk [vmem:[%s3310_s3 + $0x60] sm:$0xf] %vm1800_vm3, %v2156_v9  ;;  %v2159_v14 = vpack.c.bf16 %v1647_v38, %v1647_v38  ;;  %v1645_v15 = vmax.f32 %v1609_v3, 0.0  ;;  %v1614_v61 = vadd.f32 %v3020_v22, %v1571_v13  ;;  %v1178_v41 = vmax.f32 %v3406_v40, %v2363_v56  ;;  %v3420_v9 = vld [vmem:[#allocation26_spill] sm:$0xff] }
 0x153   :  { %v1569_v59 = vmax.f32 %v1175_v27, %v1510_v55  ;;  %v1119_v60 = vpop.f32.mrf.mxu0  ;;  %v1513_v42 = vpop.f32.mrf.mxu1  ;;  %v3419_v55 = vld [vmem:[#allocation25_spill] sm:$0xff] }
 0x154   :  { %1828 = vst.msk [vmem:[%s3310_s3 + $0x6c] sm:$0xf] %vm1800_vm3, %v2159_v14  ;;  %v2157_v25 = vpack.c.bf16 %v1645_v15, %v1645_v15  ;;  %v1650_v29 = vmax.f32 %v1614_v61, 0.0  ;;  %v1572_v58 = vmax.f32 %v1178_v41, %v2403_v57  ;;  %v1176_v63 = vmax.f32 %v3409_v62, %v1119_v60 }
 0x155   :  { %v1612_v18 = vadd.f32 %v3020_v22, %v1569_v59  ;;  %v2366_v44 = vpop.f32.mrf.mxu0  ;;  %v2406_v45 = vpop.f32.mrf.mxu1  ;;  %v3421_v38 = vmax.f32 %v3419_v55, %v3420_v9 }
 0x156   :  { %1826 = vst.msk [vmem:[%s3310_s3 + $0x64] sm:$0xf] %vm1800_vm3, %v2157_v25  ;;  %v2162_v19 = vpack.c.bf16 %v1650_v29, %v1650_v29  ;;  %v1615_v37 = vadd.f32 %v3020_v22, %v1572_v58  ;;  %v1570_v16 = vmax.f32 %v1176_v63, %v1513_v42  ;;  %v1181_v33 = vmax.f32 %v3412_v2, %v2366_v44 }
 0x157   :  { %v1648_v47 = vmax.f32 %v1612_v18, 0.0  ;;  %v1132_v48 = vpop.f32.mrf.mxu0  ;;  %v1526_v43 = vpop.f32.mrf.mxu1 }
 0x158   :  { %1831 = vst.msk [vmem:[%s3310_s3 + $0x78] sm:$0xf] %vm1800_vm3, %v2162_v19  ;;  %v1651_v6 = vmax.f32 %v1615_v37, 0.0  ;;  %v1613_v20 = vadd.f32 %v3020_v22, %v1570_v16  ;;  %v1575_v4 = vmax.f32 %v1181_v33, %v2406_v45  ;;  %v1179_v46 = vmax.f32 %v3415_v31, %v1132_v48 }
 0x159   :  { %v2160_v23 = vpack.c.bf16 %v1648_v47, %v1648_v47  ;;  %v2367_v50 = vpop.f32.mrf.mxu0  ;;  %v2407_v51 = vpop.f32.mrf.mxu1 }
 0x15a   :  { %v2163_v35 = vpack.c.bf16 %v1651_v6, %v1651_v6  ;;  %v1649_v7 = vmax.f32 %v1613_v20, 0.0  ;;  %v1618_v8 = vadd.f32 %v3020_v22, %v1575_v4  ;;  %v1573_v36 = vmax.f32 %v1179_v46, %v1526_v43 }
 0x15b   :  { %1829 = vst.msk [vmem:[%s3310_s3 + $0x70] sm:$0xf] %vm1800_vm3, %v2160_v23  ;;  %v1182_v52 = vmax.f32 %v3418_v49, %v2367_v50  ;;  %v1135_v10 = vpop.f32.mrf.mxu0  ;;  %v1529_v39 = vpop.f32.mrf.mxu1 }
 0x15c   :  { %1832 = vst.msk [vmem:[%s3310_s3 + $0x7c] sm:$0xf] %vm1800_vm3, %v2163_v35  ;;  %v2161_v11 = vpack.c.bf16 %v1649_v7, %v1649_v7  ;;  %v1654_v53 = vmax.f32 %v1618_v8, 0.0  ;;  %v1616_v54 = vadd.f32 %v3020_v22, %v1573_v36  ;;  %v1180_v3 = vmax.f32 %v3421_v38, %v1135_v10 }
 0x15d   :  { %v1576_v13 = vmax.f32 %v1182_v52, %v2407_v51 }
 0x15e   :  { %1830 = vst.msk [vmem:[%s3310_s3 + $0x74] sm:$0xf] %vm1800_vm3, %v2161_v11  ;;  %v2166_v12 = vpack.c.bf16 %v1654_v53, %v1654_v53  ;;  %v1652_v26 = vmax.f32 %v1616_v54, 0.0  ;;  %v1574_v27 = vmax.f32 %v1180_v3, %v1529_v39 }
 0x15f   :  { %v1619_v56 = vadd.f32 %v3020_v22, %v1576_v13 }
 0x160   :  { %1835 = vst.msk [vmem:[%s3310_s3 + $0x88] sm:$0xf] %vm1800_vm3, %v2166_v12  ;;  %v2164_v57 = vpack.c.bf16 %v1652_v26, %v1652_v26  ;;  %v1617_v14 = vadd.f32 %v3020_v22, %v1574_v27 }
 0x161   :  { %v1655_v15 = vmax.f32 %v1619_v56, 0.0 }
 0x162   :  { %1833 = vst.msk [vmem:[%s3310_s3 + $0x80] sm:$0xf] %vm1800_vm3, %v2164_v57  ;;  %v1653_v61 = vmax.f32 %v1617_v14, 0.0 }
 0x163   :  { %v2167_v0 = vpack.c.bf16 %v1655_v15, %v1655_v15 }
 0x164   :  { %v2165_v28 = vpack.c.bf16 %v1653_v61, %v1653_v61 }
 0x165   :  { %1836 = vst.msk [vmem:[%s3310_s3 + $0x8c] sm:$0xf] %vm1800_vm3, %v2167_v0 }
 0x166   :  { %1834 = vst.msk [vmem:[%s3310_s3 + $0x84] sm:$0xf] %vm1800_vm3, %v2165_v28 }

// kernel: convnet_forward.4
= control target key start
LH: loop header
LB: loop body
LE: loop exit
PB: predicated region body
PF: predicated region fallthrough
CT: control target
= control target key end

     0   :  { %vm320_vm0 = vcmask 1041408   ;;  %vm313_vm1 = vcmask 949248   ;;  %vm918_vm2 = vcmask 404480   ;;  %s1799_s1 = inlined_call_operand.vmem [shape: bf16[500,50], index: 1, kind: input, shape index: {}]   ;;  %s1800_s0 = inlined_call_operand.vmem [shape: bf16[4,32,500], index: 0, kind: input, shape index: {}]   ;;  %s1801_s2 = inlined_call_operand.vmem [shape: f32[1,50], index: 2, kind: input, shape index: {}]   ;;  %s1802_s3 = inlined_call_operand.vmem [shape: bf16[32,50], index: 3, kind: output, shape index: {}]  }
   0x1   :  { %v1363_v0 = vld [vmem:[%s1799_s1 + $0x78] sm:$0xff]   ;;  %v1387_v4 = vld [vmem:[%s1799_s1 + $0x70] sm:$0xff]   ;;  %v1411_v8 = vld [vmem:[%s1799_s1 + $0x68] sm:$0xff]  }
   0x2   :  { %v1368_v1 = vld [vmem:[%s1799_s1 + $0xf8] ss:$0 sps:$4 sm:$0x33]   ;;  %1032 = vmatprep.subr.bf16.mxu0 %v1363_v0  ;;  %v1393_v5 = vld [vmem:[%s1799_s1 + $0xf0] sm:$0xff]   ;;  %v1417_v9 = vld [vmem:[%s1799_s1 + $0xe8] sm:$0xff]  }
   0x3   :  { %v1373_v2 = vld [vmem:[%s1799_s1 + $0x38] sm:$0xff]   ;;  %1256 = vmatprep.subr.msk.bf16.mxu1 %vm320_vm0, %v1368_v1  ;;  %v1399_v6 = vld [vmem:[%s1799_s1 + $0x30] sm:$0xff]   ;;  %v1423_v10 = vld [vmem:[%s1799_s1 + $0x28] sm:$0xff]  }
   0x4   :  { %1033 = vmatpush3.bf16.msra.mxu0 %v1373_v2  ;;  %v1382_v3 = vld [vmem:[%s1799_s1 + $0xb8] sm:$0xff]   ;;  %v1405_v7 = vld [vmem:[%s1799_s1 + $0xb0] sm:$0xff]   ;;  %v1429_v11 = vld [vmem:[%s1799_s1 + $0xa8] sm:$0xff]  }
   0x5   :  { %1061 = vmatpush3.bf16.msra.mxu1 %v1382_v3  ;;  %1034 = vmatprep.subr.bf16.mxu0 %v1387_v4  ;;  %v1435_v12 = vld [vmem:[%s1799_s1 + $0x60] sm:$0xff]   ;;  %v1459_v16 = vld [vmem:[%s1799_s1 + $0x58] sm:$0xff]   ;;  %v1483_v20 = vld [vmem:[%s1799_s1 + $0x50] sm:$0xff]  }
   0x6   :  { %1062 = vmatprep.subr.bf16.mxu1 %v1393_v5  ;;  %v1441_v13 = vld [vmem:[%s1799_s1 + $0xe0] sm:$0xff]   ;;  %v1465_v17 = vld [vmem:[%s1799_s1 + $0xd8] sm:$0xff]   ;;  %v1489_v21 = vld [vmem:[%s1799_s1 + $0xd0] sm:$0xff]  }
   0x7   :  { %v1447_v14 = vld [vmem:[%s1799_s1 + $0x20] sm:$0xff]   ;;  %v1471_v18 = vld [vmem:[%s1799_s1 + $0x18] sm:$0xff]   ;;  %v1495_v22 = vld [vmem:[%s1799_s1 + $0x10] sm:$0xff]  }
   0x8   :  { %1035 = vmatpush3.bf16.msra.mxu0 %v1399_v6  ;;  %v1453_v15 = vld [vmem:[%s1799_s1 + $0xa0] sm:$0xff]   ;;  %v1477_v19 = vld [vmem:[%s1799_s1 + $0x98] sm:$0xff]   ;;  %v1501_v23 = vld [vmem:[%s1799_s1 + $0x90] sm:$0xff]  }
   0x9   :  { %1063 = vmatpush3.bf16.msra.mxu1 %v1405_v7  ;;  %1036 = vmatprep.subr.bf16.mxu0 %v1411_v8  ;;  %v1507_v24 = vld [vmem:[%s1799_s1 + $0x48] sm:$0xff]   ;;  %v1531_v28 = vld [vmem:[%s1799_s1 + $0x40] sm:$0xff]  }
   0xa   :  { %1064 = vmatprep.subr.bf16.mxu1 %v1417_v9  ;;  %v1513_v25 = vld [vmem:[%s1799_s1 + $0xc8] sm:$0xff]   ;;  %v1537_v29 = vld [vmem:[%s1799_s1 + $0xc0] sm:$0xff]  }
   0xb   :  { %v1519_v26 = vld [vmem:[%s1799_s1 + $0x8] sm:$0xff]   ;;  %v1543_v30 = vld [vmem:[%s1799_s1] sm:$0xff]  }
   0xc   :  { %1037 = vmatpush3.bf16.msra.mxu0 %v1423_v10  ;;  %v1525_v27 = vld [vmem:[%s1799_s1 + $0x88] sm:$0xff]   ;;  %v1549_v31 = vld [vmem:[%s1799_s1 + $0x80] sm:$0xff]  }
   0xd   :  { %1065 = vmatpush3.bf16.msra.mxu1 %v1429_v11  ;;  %1038 = vmatprep.subr.bf16.mxu0 %v1435_v12  ;;  %v1292_v32 = vld [vmem:[%s1800_s0] ss:$16 sps:$4 sm:$0xff]   ;;  %v1294_v33 = vld [vmem:[%s1800_s0 + $0x4] ss:$16 sps:$4 sm:$0xff]   ;;  %v1295_v34 = vld [vmem:[%s1800_s0 + $0x8] ss:$16 sps:$4 sm:$0xff]  }
   0xe   :  { %1066 = vmatprep.subr.bf16.mxu1 %v1441_v13  ;;  %356 = vmatprep.mubr.bf16.mxu0 %v1294_v33  ;;  %v1297_v35 = vld [vmem:[%s1800_s0 + $0xc] ss:$16 sps:$4 sm:$0xff]   ;;  %v1298_v36 = vld [vmem:[%s1800_s0 + $0x24] ss:$16 sps:$4 sm:$0xff]   ;;  %v1302_v38 = vld [vmem:[%s1800_s0 + $0x20] ss:$16 sps:$4 sm:$0xff]  }
   0xf   :  { %967 = vmatprep.mubr.msk.bf16.mxu1 %vm313_vm1, %v1297_v35  ;;  %v1300_v37 = vld [vmem:[%s1800_s0 + $0x2c] ss:$16 sps:$4 sm:$0xff]   ;;  %v1306_v39 = vld [vmem:[%s1800_s0 + $0x44] ss:$16 sps:$4 sm:$0xff]   ;;  %v1303_v40 = vld [vmem:[%s1800_s0 + $0x28] ss:$16 sps:$4 sm:$0xff]  }
  0x10   :  { %1039 = vmatpush3.bf16.msra.mxu0 %v1447_v14  ;;  %v1309_v41 = vld [vmem:[%s1800_s0 + $0x4c] ss:$16 sps:$4 sm:$0xff]   ;;  %v1304_v42 = vld [vmem:[%s1800_s0 + $0x40] ss:$16 sps:$4 sm:$0xff]   ;;  %v1310_v43 = vld [vmem:[%s1800_s0 + $0x64] ss:$16 sps:$4 sm:$0xff]  }
  0x11   :  { %1067 = vmatpush3.bf16.msra.mxu1 %v1453_v15  ;;  %1040 = vmatprep.subr.bf16.mxu0 %v1459_v16  ;;  %v1307_v44 = vld [vmem:[%s1800_s0 + $0x48] ss:$16 sps:$4 sm:$0xff]   ;;  %v1312_v45 = vld [vmem:[%s1800_s0 + $0x6c] ss:$16 sps:$4 sm:$0xff]   ;;  %v1314_v46 = vld [vmem:[%s1800_s0 + $0x60] ss:$16 sps:$4 sm:$0xff]  }
  0x12   :  { %1068 = vmatprep.subr.bf16.mxu1 %v1465_v17  ;;  %v1318_v47 = vld [vmem:[%s1800_s0 + $0x84] ss:$16 sps:$4 sm:$0xff]   ;;  %v1315_v48 = vld [vmem:[%s1800_s0 + $0x68] ss:$16 sps:$4 sm:$0xff]   ;;  %v1321_v49 = vld [vmem:[%s1800_s0 + $0x8c] ss:$16 sps:$4 sm:$0xff]  }
  0x13   :  { %v1316_v50 = vld [vmem:[%s1800_s0 + $0x80] ss:$16 sps:$4 sm:$0xff]   ;;  %v1322_v51 = vld [vmem:[%s1800_s0 + $0xa4] ss:$16 sps:$4 sm:$0xff]   ;;  %v1319_v52 = vld [vmem:[%s1800_s0 + $0x88] ss:$16 sps:$4 sm:$0xff]  }
  0x14   :  { %1041 = vmatpush3.bf16.msra.mxu0 %v1471_v18  ;;  %v1324_v53 = vld [vmem:[%s1800_s0 + $0xac] ss:$16 sps:$4 sm:$0xff]   ;;  %v1326_v54 = vld [vmem:[%s1800_s0 + $0xa0] ss:$16 sps:$4 sm:$0xff]   ;;  %v1330_v55 = vld [vmem:[%s1800_s0 + $0xc4] ss:$16 sps:$4 sm:$0xff]  }
  0x15   :  { %1069 = vmatpush3.bf16.msra.mxu1 %v1477_v19  ;;  %1042 = vmatprep.subr.bf16.mxu0 %v1483_v20  ;;  %v1327_v56 = vld [vmem:[%s1800_s0 + $0xa8] ss:$16 sps:$4 sm:$0xff]   ;;  %v1333_v57 = vld [vmem:[%s1800_s0 + $0xcc] ss:$16 sps:$4 sm:$0xff]   ;;  %v1328_v58 = vld [vmem:[%s1800_s0 + $0xc0] ss:$16 sps:$4 sm:$0xff]  }
  0x16   :  { %1070 = vmatprep.subr.bf16.mxu1 %v1489_v21  ;;  %v1334_v59 = vld [vmem:[%s1800_s0 + $0xe4] ss:$16 sps:$4 sm:$0xff]   ;;  %v1331_v60 = vld [vmem:[%s1800_s0 + $0xc8] ss:$16 sps:$4 sm:$0xff]   ;;  %v1336_v61 = vld [vmem:[%s1800_s0 + $0xec] ss:$16 sps:$4 sm:$0xff]  }
  0x17   :  { %v1338_v62 = vld [vmem:[%s1800_s0 + $0xe0] ss:$16 sps:$4 sm:$0xff]   ;;  %v1339_v63 = vld [vmem:[%s1800_s0 + $0xe8] ss:$16 sps:$4 sm:$0xff]  }
  0x18   :  { %1043 = vmatpush3.bf16.msra.mxu0 %v1495_v22 }
  0x19   :  { %1071 = vmatpush3.bf16.msra.mxu1 %v1501_v23  ;;  %1044 = vmatprep.subr.bf16.mxu0 %v1507_v24 }
  0x1a   :  { %1072 = vmatprep.subr.bf16.mxu1 %v1513_v25 }
  0x1c   :  { %1045 = vmatpush3.bf16.msra.mxu0 %v1519_v26 }
  0x1d   :  { %1073 = vmatpush3.bf16.msra.mxu1 %v1525_v27  ;;  %1046 = vmatprep.subr.bf16.mxu0 %v1531_v28 }
  0x1e   :  { %1074 = vmatprep.subr.bf16.mxu1 %v1537_v29 }
  0x20   :  { %1047 = vmatpush3.bf16.msra.mxu0 %v1543_v30 }
  0x21   :  { %1075 = vmatpush3.bf16.msra.mxu1 %v1549_v31  ;;  %1088 = vmatprep.subr.bf16.mxu0 %v1363_v0 }
  0x22   :  { %1257 = vmatprep.subr.msk.bf16.mxu1 %vm320_vm0, %v1368_v1 }
  0x23   :  { %357 = vmatmul.mubr.bf16.vlgmr.msra.gmra.mxu0 %v1292_v32 }
  0x24   :  { %1089 = vmatpush3.bf16.msra.mxu0 %v1373_v2  ;;  %406 = vmatmul.mubr.bf16.vlgmr.msra.gmra.mxu1 %v1295_v34 }
  0x25   :  { %1090 = vmatprep.subr.bf16.mxu0 %v1387_v4  ;;  %1117 = vmatpush3.bf16.msra.mxu1 %v1382_v3 }
  0x26   :  { %364 = vmatprep.mubr.bf16.mxu0 %v1298_v36  ;;  %1118 = vmatprep.subr.bf16.mxu1 %v1393_v5 }
  0x27   :  { %968 = vmatprep.mubr.msk.bf16.mxu1 %vm313_vm1, %v1300_v37 }
  0x28   :  { %1091 = vmatpush3.bf16.msra.mxu0 %v1399_v6 }
  0x29   :  { %1092 = vmatprep.subr.bf16.mxu0 %v1411_v8  ;;  %1119 = vmatpush3.bf16.msra.mxu1 %v1405_v7 }
  0x2a   :  { %1120 = vmatprep.subr.bf16.mxu1 %v1417_v9 }
  0x2b   :  { %365 = vmatmul.mubr.bf16.gmra.mxu0 %v1302_v38 }
  0x2c   :  { %1093 = vmatpush3.bf16.msra.mxu0 %v1423_v10  ;;  %507 = vmatprep.mubr.bf16.mxu0 %v1306_v39 }
  0x2d   :  { %1094 = vmatprep.subr.bf16.mxu0 %v1435_v12  ;;  %414 = vmatmul.mubr.bf16.gmra.mxu1 %v1303_v40 }
  0x2e   :  { %1121 = vmatpush3.bf16.msra.mxu1 %v1429_v11  ;;  %985 = vmatprep.mubr.msk.bf16.mxu1 %vm313_vm1, %v1309_v41 }
  0x2f   :  { %1122 = vmatprep.subr.bf16.mxu1 %v1441_v13 }
  0x30   :  { %1095 = vmatpush3.bf16.msra.mxu0 %v1447_v14 }
  0x31   :  { %1096 = vmatprep.subr.bf16.mxu0 %v1459_v16 }
  0x32   :  { %1123 = vmatpush3.bf16.msra.mxu1 %v1453_v15 }
  0x33   :  { %1124 = vmatprep.subr.bf16.mxu1 %v1465_v17 }
  0x34   :  { %1097 = vmatpush3.bf16.msra.mxu0 %v1471_v18 }
  0x35   :  { %1098 = vmatprep.subr.bf16.mxu0 %v1483_v20 }
  0x36   :  { %1125 = vmatpush3.bf16.msra.mxu1 %v1477_v19 }
  0x37   :  { %1126 = vmatprep.subr.bf16.mxu1 %v1489_v21 }
  0x38   :  { %1099 = vmatpush3.bf16.msra.mxu0 %v1495_v22 }
  0x39   :  { %1100 = vmatprep.subr.bf16.mxu0 %v1507_v24 }
  0x3a   :  { %1127 = vmatpush3.bf16.msra.mxu1 %v1501_v23 }
  0x3b   :  { %1128 = vmatprep.subr.bf16.mxu1 %v1513_v25 }
  0x3c   :  { %1101 = vmatpush3.bf16.msra.mxu0 %v1519_v26 }
  0x3d   :  { %1102 = vmatprep.subr.bf16.mxu0 %v1531_v28 }
  0x3e   :  { %1129 = vmatpush3.bf16.msra.mxu1 %v1525_v27 }
  0x3f   :  { %1130 = vmatprep.subr.bf16.mxu1 %v1537_v29 }
  0x40   :  { %1103 = vmatpush3.bf16.msra.mxu0 %v1543_v30 }
  0x41   :  { %1144 = vmatprep.subr.bf16.mxu0 %v1363_v0 }
  0x42   :  { %1131 = vmatpush3.bf16.msra.mxu1 %v1549_v31 }
  0x43   :  { %508 = vmatmul.mubr.bf16.vlgmr.msra.gmra.mxu0 %v1304_v42  ;;  %1258 = vmatprep.subr.msk.bf16.mxu1 %vm320_vm0, %v1368_v1 }
  0x44   :  { %1145 = vmatpush3.bf16.msra.mxu0 %v1373_v2  ;;  %515 = vmatprep.mubr.bf16.mxu0 %v1310_v43 }
  0x45   :  { %557 = vmatmul.mubr.bf16.vlgmr.msra.gmra.mxu1 %v1307_v44  ;;  %1146 = vmatprep.subr.bf16.mxu0 %v1387_v4 }
  0x46   :  { %1173 = vmatpush3.bf16.msra.mxu1 %v1382_v3  ;;  %986 = vmatprep.mubr.msk.bf16.mxu1 %vm313_vm1, %v1312_v45 }
  0x47   :  { %1174 = vmatprep.subr.bf16.mxu1 %v1393_v5 }
  0x48   :  { %1147 = vmatpush3.bf16.msra.mxu0 %v1399_v6 }
  0x49   :  { %1148 = vmatprep.subr.bf16.mxu0 %v1411_v8 }
  0x4a   :  { %1175 = vmatpush3.bf16.msra.mxu1 %v1405_v7 }
  0x4b   :  { %516 = vmatmul.mubr.bf16.gmra.mxu0 %v1314_v46  ;;  %1176 = vmatprep.subr.bf16.mxu1 %v1417_v9 }
  0x4c   :  { %1149 = vmatpush3.bf16.msra.mxu0 %v1423_v10  ;;  %662 = vmatprep.mubr.bf16.mxu0 %v1318_v47 }
  0x4d   :  { %565 = vmatmul.mubr.bf16.gmra.mxu1 %v1315_v48  ;;  %1150 = vmatprep.subr.bf16.mxu0 %v1435_v12 }
  0x4e   :  { %1177 = vmatpush3.bf16.msra.mxu1 %v1429_v11  ;;  %1003 = vmatprep.mubr.msk.bf16.mxu1 %vm313_vm1, %v1321_v49 }
  0x4f   :  { %1178 = vmatprep.subr.bf16.mxu1 %v1441_v13 }
  0x50   :  { %1151 = vmatpush3.bf16.msra.mxu0 %v1447_v14 }
  0x51   :  { %1152 = vmatprep.subr.bf16.mxu0 %v1459_v16 }
  0x52   :  { %1179 = vmatpush3.bf16.msra.mxu1 %v1453_v15 }
  0x53   :  { %1180 = vmatprep.subr.bf16.mxu1 %v1465_v17 }
  0x54   :  { %1153 = vmatpush3.bf16.msra.mxu0 %v1471_v18 }
  0x55   :  { %1154 = vmatprep.subr.bf16.mxu0 %v1483_v20 }
  0x56   :  { %1181 = vmatpush3.bf16.msra.mxu1 %v1477_v19 }
  0x57   :  { %1182 = vmatprep.subr.bf16.mxu1 %v1489_v21 }
  0x58   :  { %1155 = vmatpush3.bf16.msra.mxu0 %v1495_v22 }
  0x59   :  { %1156 = vmatprep.subr.bf16.mxu0 %v1507_v24 }
  0x5a   :  { %1183 = vmatpush3.bf16.msra.mxu1 %v1501_v23 }
  0x5b   :  { %1184 = vmatprep.subr.bf16.mxu1 %v1513_v25 }
  0x5c   :  { %1157 = vmatpush3.bf16.msra.mxu0 %v1519_v26 }
  0x5d   :  { %1158 = vmatprep.subr.bf16.mxu0 %v1531_v28 }
  0x5e   :  { %1185 = vmatpush3.bf16.msra.mxu1 %v1525_v27 }
  0x5f   :  { %1186 = vmatprep.subr.bf16.mxu1 %v1537_v29 }
  0x60   :  { %1159 = vmatpush3.bf16.msra.mxu0 %v1543_v30 }
  0x61   :  { %1200 = vmatprep.subr.bf16.mxu0 %v1363_v0 }
  0x62   :  { %1187 = vmatpush3.bf16.msra.mxu1 %v1549_v31 }
  0x63   :  { %663 = vmatmul.mubr.bf16.vlgmr.msra.gmra.mxu0 %v1316_v50  ;;  %1259 = vmatprep.subr.msk.bf16.mxu1 %vm320_vm0, %v1368_v1 }
  0x64   :  { %1201 = vmatpush3.bf16.msra.mxu0 %v1373_v2  ;;  %670 = vmatprep.mubr.bf16.mxu0 %v1322_v51 }
  0x65   :  { %712 = vmatmul.mubr.bf16.vlgmr.msra.gmra.mxu1 %v1319_v52  ;;  %1202 = vmatprep.subr.bf16.mxu0 %v1387_v4 }
  0x66   :  { %1229 = vmatpush3.bf16.msra.mxu1 %v1382_v3  ;;  %1004 = vmatprep.mubr.msk.bf16.mxu1 %vm313_vm1, %v1324_v53 }
  0x67   :  { %1230 = vmatprep.subr.bf16.mxu1 %v1393_v5 }
  0x68   :  { %1203 = vmatpush3.bf16.msra.mxu0 %v1399_v6 }
  0x69   :  { %1204 = vmatprep.subr.bf16.mxu0 %v1411_v8 }
  0x6a   :  { %1231 = vmatpush3.bf16.msra.mxu1 %v1405_v7 }
  0x6b   :  { %671 = vmatmul.mubr.bf16.gmra.mxu0 %v1326_v54  ;;  %1232 = vmatprep.subr.bf16.mxu1 %v1417_v9 }
  0x6c   :  { %1205 = vmatpush3.bf16.msra.mxu0 %v1423_v10  ;;  %817 = vmatprep.mubr.bf16.mxu0 %v1330_v55 }
  0x6d   :  { %720 = vmatmul.mubr.bf16.gmra.mxu1 %v1327_v56  ;;  %1206 = vmatprep.subr.bf16.mxu0 %v1435_v12 }
  0x6e   :  { %1233 = vmatpush3.bf16.msra.mxu1 %v1429_v11  ;;  %1021 = vmatprep.mubr.msk.bf16.mxu1 %vm313_vm1, %v1333_v57 }
  0x6f   :  { %1234 = vmatprep.subr.bf16.mxu1 %v1441_v13 }
  0x70   :  { %1207 = vmatpush3.bf16.msra.mxu0 %v1447_v14 }
  0x71   :  { %1208 = vmatprep.subr.bf16.mxu0 %v1459_v16 }
  0x72   :  { %1235 = vmatpush3.bf16.msra.mxu1 %v1453_v15 }
  0x73   :  { %1236 = vmatprep.subr.bf16.mxu1 %v1465_v17 }
  0x74   :  { %1209 = vmatpush3.bf16.msra.mxu0 %v1471_v18 }
  0x75   :  { %1210 = vmatprep.subr.bf16.mxu0 %v1483_v20 }
  0x76   :  { %1237 = vmatpush3.bf16.msra.mxu1 %v1477_v19 }
  0x77   :  { %1238 = vmatprep.subr.bf16.mxu1 %v1489_v21 }
  0x78   :  { %1211 = vmatpush3.bf16.msra.mxu0 %v1495_v22 }
  0x79   :  { %1212 = vmatprep.subr.bf16.mxu0 %v1507_v24 }
  0x7a   :  { %1239 = vmatpush3.bf16.msra.mxu1 %v1501_v23 }
  0x7b   :  { %1240 = vmatprep.subr.bf16.mxu1 %v1513_v25 }
  0x7c   :  { %1213 = vmatpush3.bf16.msra.mxu0 %v1519_v26 }
  0x7d   :  { %1214 = vmatprep.subr.bf16.mxu0 %v1531_v28 }
  0x7e   :  { %1241 = vmatpush3.bf16.msra.mxu1 %v1525_v27 }
  0x7f   :  { %1242 = vmatprep.subr.bf16.mxu1 %v1537_v29 }
  0x80   :  { %1215 = vmatpush3.bf16.msra.mxu0 %v1543_v30 }
  0x82   :  { %1243 = vmatpush3.bf16.msra.mxu1 %v1549_v31 }
  0x83   :  { %818 = vmatmul.mubr.bf16.vlgmr.msra.gmra.mxu0 %v1328_v58 }
  0x84   :  { %825 = vmatprep.mubr.bf16.mxu0 %v1334_v59 }
  0x85   :  { %867 = vmatmul.mubr.bf16.vlgmr.msra.gmra.mxu1 %v1331_v60 }
  0x86   :  { %1022 = vmatprep.mubr.msk.bf16.mxu1 %vm313_vm1, %v1336_v61 }
  0x8b   :  { %826 = vmatmul.mubr.bf16.gmra.mxu0 %v1338_v62 }
  0x8d   :  { %875 = vmatmul.mubr.bf16.gmra.mxu1 %v1339_v63 }
  0xe3   :  { %v1048_v0 = vpop.f32.mrf.mxu0 }
  0xe4   :  { %v1076_v1 = vpop.f32.mrf.mxu1 }
  0xe5   :  { %v1049_v2 = vpop.f32.mrf.mxu0 }
  0xe6   :  { %v1077_v3 = vpop.f32.mrf.mxu1  ;;  %v1050_v48 = vadd.f32 %v1049_v2, %v1048_v0 }
  0xe7   :  { %v1051_v4 = vpop.f32.mrf.mxu0  ;;  %v1078_v49 = vadd.f32 %v1077_v3, %v1076_v1 }
  0xe8   :  { %v1079_v5 = vpop.f32.mrf.mxu1 }
  0xe9   :  { %v1052_v6 = vpop.f32.mrf.mxu0  ;;  %v408_v58 = vadd.f32 %v1078_v49, %v1050_v48 }
  0xea   :  { %v1080_v7 = vpop.f32.mrf.mxu1  ;;  %v1053_v59 = vadd.f32 %v1052_v6, %v1051_v4 }
  0xeb   :  { %v1054_v8 = vpop.f32.mrf.mxu0  ;;  %v1081_v60 = vadd.f32 %v1080_v7, %v1079_v5 }
  0xed   :  { %v1082_v9 = vpop.f32.mrf.mxu1  ;;  %v1055_v10 = vpop.f32.mrf.mxu0 }
  0xee   :  { %v1056_v61 = vadd.f32 %v1055_v10, %v1054_v8 }
  0xef   :  { %v1083_v11 = vpop.f32.mrf.mxu1  ;;  %v1756_v12 = vpop.f32.mrf.mxu0 }
  0xf0   :  { %v1084_v0 = vadd.f32 %v1083_v11, %v1082_v9 }
  0xf1   :  { %v1758_v13 = vpop.f32.mrf.mxu1  ;;  %v1760_v14 = vpop.f32.mrf.mxu0 }
  0xf2   :  { %1803 = vst [vmem:[#allocation2_spill] sm:$0xff] %v1758_v13  ;;  %v1059_v9 = vadd.f32 %v1760_v14, %v1756_v12 }
  0xf3   :  { %v1762_v15 = vpop.f32.mrf.mxu1 }
  0xf4   :  { %1804 = vst [vmem:[#allocation3_spill] sm:$0xff] %v1762_v15 }
 0x103   :  { %v1104_v16 = vpop.f32.mrf.mxu0 }
 0x105   :  { %v1132_v17 = vpop.f32.mrf.mxu1  ;;  %v1105_v18 = vpop.f32.mrf.mxu0 }
 0x106   :  { %v1106_v46 = vadd.f32 %v1105_v18, %v1104_v16 }
 0x107   :  { %v1133_v19 = vpop.f32.mrf.mxu1  ;;  %v1107_v20 = vpop.f32.mrf.mxu0 }
 0x108   :  { %v1134_v47 = vadd.f32 %v1133_v19, %v1132_v17 }
 0x109   :  { %v1135_v21 = vpop.f32.mrf.mxu1  ;;  %v1108_v22 = vpop.f32.mrf.mxu0 }
 0x10a   :  { %v1109_v53 = vadd.f32 %v1108_v22, %v1107_v20  ;;  %v559_v57 = vadd.f32 %v1134_v47, %v1106_v46  ;;  %v411_v22 = vadd.f32 %v1081_v60, %v1053_v59 }
 0x10b   :  { %v1136_v23 = vpop.f32.mrf.mxu1  ;;  %v1110_v24 = vpop.f32.mrf.mxu0 }
 0x10c   :  { %v1137_v54 = vadd.f32 %v1136_v23, %v1135_v21  ;;  %v573_v20 = vmax.f32 %v408_v58, %v559_v57 }
 0x10d   :  { %v1138_v25 = vpop.f32.mrf.mxu1  ;;  %v1111_v26 = vpop.f32.mrf.mxu0 }
 0x10e   :  { %v562_v1 = vadd.f32 %v1137_v54, %v1109_v53  ;;  %v1112_v2 = vadd.f32 %v1111_v26, %v1110_v24 }
 0x10f   :  { %v1139_v27 = vpop.f32.mrf.mxu1  ;;  %v1764_v28 = vpop.f32.mrf.mxu0 }
 0x110   :  { %v1140_v3 = vadd.f32 %v1139_v27, %v1138_v25  ;;  %v574_v11 = vmax.f32 %v411_v22, %v562_v1  ;;  %v1023_v25 = vld [vmem:[%s1801_s2] ss:$0 sm:$0xff] }
 0x111   :  { %v1766_v29 = vpop.f32.mrf.mxu1  ;;  %v1768_v30 = vpop.f32.mrf.mxu0 }
 0x112   :  { %v567_v24 = vadd.f32 %v1140_v3, %v1112_v2 }
 0x113   :  { %v1770_v31 = vpop.f32.mrf.mxu1 }
 0x123   :  { %v1160_v32 = vpop.f32.mrf.mxu0 }
 0x125   :  { %v1188_v33 = vpop.f32.mrf.mxu1  ;;  %v1161_v34 = vpop.f32.mrf.mxu0 }
 0x126   :  { %v1162_v51 = vadd.f32 %v1161_v34, %v1160_v32  ;;  %v1115_v34 = vadd.f32 %v1768_v30, %v1764_v28 }
 0x127   :  { %v1189_v35 = vpop.f32.mrf.mxu1  ;;  %v1163_v36 = vpop.f32.mrf.mxu0 }
 0x128   :  { %v1190_v52 = vadd.f32 %v1189_v35, %v1188_v33  ;;  %v416_v33 = vadd.f32 %v1084_v0, %v1056_v61 }
 0x129   :  { %v1191_v37 = vpop.f32.mrf.mxu1  ;;  %v1164_v38 = vpop.f32.mrf.mxu0 }
 0x12a   :  { %v714_v15 = vadd.f32 %v1190_v52, %v1162_v51  ;;  %v1165_v13 = vadd.f32 %v1164_v38, %v1163_v36  ;;  %v1805_v36 = vld [vmem:[#allocation2_spill] sm:$0xff]  ;;  %v575_v48 = vmax.f32 %v416_v33, %v567_v24 }
 0x12b   :  { %v1192_v39 = vpop.f32.mrf.mxu1  ;;  %v1166_v40 = vpop.f32.mrf.mxu0 }
 0x12c   :  { %v1193_v16 = vadd.f32 %v1192_v39, %v1191_v37  ;;  %v728_v6 = vmax.f32 %v573_v20, %v714_v15  ;;  %v1806_v37 = vld [vmem:[#allocation3_spill] sm:$0xff] }
 0x12d   :  { %v1194_v41 = vpop.f32.mrf.mxu1  ;;  %v1167_v42 = vpop.f32.mrf.mxu0  ;;  %v1087_v38 = vadd.f32 %v1806_v37, %v1805_v36 }
 0x12e   :  { %v1168_v23 = vadd.f32 %v1167_v42, %v1166_v40  ;;  %v717_v7 = vadd.f32 %v1193_v16, %v1165_v13  ;;  %v1143_v13 = vadd.f32 %v1770_v31, %v1766_v29 }
 0x12f   :  { %v1195_v43 = vpop.f32.mrf.mxu1  ;;  %v1169_v44 = vpop.f32.mrf.mxu0  ;;  %v419_v52 = vadd.f32 %v1087_v38, %v1059_v9 }
 0x130   :  { %v1196_v32 = vadd.f32 %v1195_v43, %v1194_v41  ;;  %v729_v42 = vmax.f32 %v574_v11, %v717_v7  ;;  %v570_v30 = vadd.f32 %v1143_v13, %v1115_v34 }
 0x131   :  { %v1197_v45 = vpop.f32.mrf.mxu1  ;;  %v1170_v50 = vpop.f32.mrf.mxu0 }
 0x132   :  { %v722_v12 = vadd.f32 %v1196_v32, %v1168_v23  ;;  %v1171_v14 = vadd.f32 %v1170_v50, %v1169_v44  ;;  %v576_v59 = vmax.f32 %v419_v52, %v570_v30 }
 0x133   :  { %v1198_v55 = vpop.f32.mrf.mxu1 }
 0x134   :  { %v1199_v39 = vadd.f32 %v1198_v55, %v1197_v45  ;;  %v730_v53 = vmax.f32 %v575_v48, %v722_v12 }
 0x136   :  { %v725_v54 = vadd.f32 %v1199_v39, %v1171_v14 }
 0x143   :  { %v1216_v56 = vpop.f32.mrf.mxu0 }
 0x145   :  { %v1244_v62 = vpop.f32.mrf.mxu1  ;;  %v1217_v63 = vpop.f32.mrf.mxu0 }
 0x146   :  { %v1218_v17 = vadd.f32 %v1217_v63, %v1216_v56  ;;  %v731_v63 = vmax.f32 %v576_v59, %v725_v54 }
 0x147   :  { %v1245_v18 = vpop.f32.mrf.mxu1  ;;  %v1219_v19 = vpop.f32.mrf.mxu0 }
 0x148   :  { %v1246_v21 = vadd.f32 %v1245_v18, %v1244_v62 }
 0x149   :  { %v1247_v4 = vpop.f32.mrf.mxu1  ;;  %v1220_v5 = vpop.f32.mrf.mxu0 }
 0x14a   :  { %v869_v8 = vadd.f32 %v1246_v21, %v1218_v17  ;;  %v1221_v10 = vadd.f32 %v1220_v5, %v1219_v19 }
 0x14b   :  { %v1248_v26 = vpop.f32.mrf.mxu1  ;;  %v1222_v27 = vpop.f32.mrf.mxu0 }
 0x14c   :  { %v883_v15 = vmax.f32 %v728_v6, %v869_v8  ;;  %v1249_v35 = vadd.f32 %v1248_v26, %v1247_v4 }
 0x14d   :  { %v1250_v40 = vpop.f32.mrf.mxu1  ;;  %v1223_v41 = vpop.f32.mrf.mxu0 }
 0x14e   :  { %v894_v43 = vadd.f32 %v1023_v25, %v883_v15  ;;  %v872_v46 = vadd.f32 %v1249_v35, %v1221_v10  ;;  %v1224_v47 = vadd.f32 %v1223_v41, %v1222_v27 }
 0x14f   :  { %v1251_v49 = vpop.f32.mrf.mxu1  ;;  %v1225_v28 = vpop.f32.mrf.mxu0 }
 0x150   :  { %v898_v51 = vmax.f32 %v894_v43, 0.0  ;;  %v884_v29 = vmax.f32 %v729_v42, %v872_v46  ;;  %v1252_v31 = vadd.f32 %v1251_v49, %v1250_v40 }
 0x151   :  { %v1253_v56 = vpop.f32.mrf.mxu1  ;;  %v1226_v44 = vpop.f32.mrf.mxu0 }
 0x152   :  { %v1028_v45 = vpack.c.bf16 %v898_v51, %v898_v51  ;;  %v895_v50 = vadd.f32 %v1023_v25, %v884_v29  ;;  %v877_v55 = vadd.f32 %v1252_v31, %v1224_v47  ;;  %v1227_v57 = vadd.f32 %v1226_v44, %v1225_v28 }
 0x153   :  { %v1254_v58 = vpop.f32.mrf.mxu1 }
 0x154   :  { %919 = vst.msk [vmem:[%s1802_s3] sm:$0xf] %vm918_vm2, %v1028_v45  ;;  %v899_v60 = vmax.f32 %v895_v50, 0.0  ;;  %v885_v61 = vmax.f32 %v730_v53, %v877_v55  ;;  %v1255_v62 = vadd.f32 %v1254_v58, %v1253_v56 }
 0x156   :  { %v1029_v16 = vpack.c.bf16 %v899_v60, %v899_v60  ;;  %v896_v17 = vadd.f32 %v1023_v25, %v885_v61  ;;  %v880_v0 = vadd.f32 %v1255_v62, %v1227_v57 }
 0x158   :  { %920 = vst.msk [vmem:[%s1802_s3 + $0x4] sm:$0xf] %vm918_vm2, %v1029_v16  ;;  %v900_v1 = vmax.f32 %v896_v17, 0.0  ;;  %v886_v2 = vmax.f32 %v731_v63, %v880_v0 }
 0x15a   :  { %v1030_v3 = vpack.c.bf16 %v900_v1, %v900_v1  ;;  %v897_v18 = vadd.f32 %v1023_v25, %v886_v2 }
 0x15c   :  { %921 = vst.msk [vmem:[%s1802_s3 + $0x8] sm:$0xf] %vm918_vm2, %v1030_v3  ;;  %v901_v19 = vmax.f32 %v897_v18, 0.0 }
 0x15e   :  { %v1031_v20 = vpack.c.bf16 %v901_v19, %v901_v19 }
 0x160   :  { %922 = vst.msk [vmem:[%s1802_s3 + $0xc] sm:$0xf] %vm918_vm2, %v1031_v20 }

// kernel: convnet_forward.5
= control target key start
LH: loop header
LB: loop body
LE: loop exit
PB: predicated region body
PF: predicated region fallthrough
CT: control target
= control target key end

     0   :  { %v225_v36 = vlaneseq  ;;  %v2642_v37 = vmov 1966171168   ;;  %vm1300_vm0 = vcmask 261120   ;;  %s3436_s0 = inlined_call_operand.vmem [shape: bf16[2,800], index: 0, kind: input, shape index: {}]   ;;  %s3437_s1 = inlined_call_operand.vmem [shape: bf16[800,500], index: 1, kind: input, shape index: {}]   ;;  %s3438_s2 = inlined_call_operand.vmem [shape: f32[1,500], index: 2, kind: input, shape index: {}]   ;;  %s3439_s3 = inlined_call_operand.vmem [shape: bf16[500,10], index: 3, kind: input, shape index: {}]   ;;  %s3440_s4 = inlined_call_operand.vmem [shape: f32[1,10], index: 4, kind: input, shape index: {}]   ;;  %s3441_s5 = inlined_call_operand.hbm [shape: f32[2,10], index: 5, kind: output, shape index: {}]  }
   0x1   :  { %v2287_v0 = vld [vmem:[%s3437_s1 + $0xe4] ss:$16 sps:$4 sm:$0xff]   ;;  %v2291_v2 = vld [vmem:[%s3437_s1 + $0xe0] ss:$16 sps:$4 sm:$0xff]   ;;  %v248_v38 = vunpack.c.l.s4 %v2642_v37  ;;  %v2413_v37 = vld [vmem:[%s3437_s1 + $0xac] ss:$16 sps:$4 sm:$0xff]  }
   0x2   :  { %v2289_v1 = vld [vmem:[%s3437_s1 + $0x2e4] ss:$16 sps:$4 sm:$0xff]   ;;  %1304 = vmatprep.subr.bf16.mxu0 %v2287_v0  ;;  %v2292_v3 = vld [vmem:[%s3437_s1 + $0x2e0] ss:$16 sps:$4 sm:$0xff]   ;;  %v2792_v42 = vshrl.u32 %v225_v36, 7 }
   0x3   :  { %1345 = vmatprep.subr.bf16.mxu1 %v2289_v1  ;;  %v2293_v4 = vld [vmem:[%s3437_s1 + $0xc4] ss:$16 sps:$4 sm:$0xff]   ;;  %1305 = vmatpush1.bf16.msra.mxu0 %v2291_v2  ;;  %v2297_v6 = vld [vmem:[%s3437_s1 + $0xc0] ss:$16 sps:$4 sm:$0xff]   ;;  %v249_v43 = vunpack.c.0.s8 %v248_v38 }
   0x4   :  { %1346 = vmatpush1.bf16.msra.mxu1 %v2292_v3  ;;  %v2295_v5 = vld [vmem:[%s3437_s1 + $0x2c4] ss:$16 sps:$4 sm:$0xff]   ;;  %1306 = vmatprep.subr.bf16.mxu0 %v2293_v4  ;;  %v2298_v7 = vld [vmem:[%s3437_s1 + $0x2c0] ss:$16 sps:$4 sm:$0xff]  }
   0x5   :  { %1347 = vmatprep.subr.bf16.mxu1 %v2295_v5  ;;  %v2299_v8 = vld [vmem:[%s3437_s1 + $0xa4] ss:$16 sps:$4 sm:$0xff]   ;;  %v2303_v10 = vld [vmem:[%s3437_s1 + $0xa0] ss:$16 sps:$4 sm:$0xff]   ;;  %v2810_v49 = vsub.s32 %v249_v43, %v2792_v42 }
   0x6   :  { %v2301_v9 = vld [vmem:[%s3437_s1 + $0x2a4] ss:$16 sps:$4 sm:$0xff]   ;;  %v2304_v11 = vld [vmem:[%s3437_s1 + $0x2a0] ss:$16 sps:$4 sm:$0xff]  }
   0x7   :  { %1307 = vmatpush1.bf16.msra.mxu0 %v2297_v6  ;;  %v2305_v12 = vld [vmem:[%s3437_s1 + $0x84] ss:$16 sps:$4 sm:$0xff]   ;;  %v2309_v14 = vld [vmem:[%s3437_s1 + $0x80] ss:$16 sps:$4 sm:$0xff]  }
   0x8   :  { %1348 = vmatpush1.bf16.msra.mxu1 %v2298_v7  ;;  %1308 = vmatprep.subr.bf16.mxu0 %v2299_v8  ;;  %v2307_v13 = vld [vmem:[%s3437_s1 + $0x284] ss:$16 sps:$4 sm:$0xff]   ;;  %v2310_v15 = vld [vmem:[%s3437_s1 + $0x280] ss:$16 sps:$4 sm:$0xff]  }
   0x9   :  { %1349 = vmatprep.subr.bf16.mxu1 %v2301_v9  ;;  %v2311_v16 = vld [vmem:[%s3437_s1 + $0x64] ss:$16 sps:$4 sm:$0xff]   ;;  %v2315_v18 = vld [vmem:[%s3437_s1 + $0x60] ss:$16 sps:$4 sm:$0xff]  }
   0xa   :  { %v2313_v17 = vld [vmem:[%s3437_s1 + $0x264] ss:$16 sps:$4 sm:$0xff]   ;;  %v2316_v19 = vld [vmem:[%s3437_s1 + $0x260] ss:$16 sps:$4 sm:$0xff]  }
   0xb   :  { %1309 = vmatpush1.bf16.msra.mxu0 %v2303_v10  ;;  %v2317_v20 = vld [vmem:[%s3437_s1 + $0x44] ss:$16 sps:$4 sm:$0xff]   ;;  %v2321_v22 = vld [vmem:[%s3437_s1 + $0x40] ss:$16 sps:$4 sm:$0xff]  }
   0xc   :  { %1350 = vmatpush1.bf16.msra.mxu1 %v2304_v11  ;;  %1310 = vmatprep.subr.bf16.mxu0 %v2305_v12  ;;  %v2319_v21 = vld [vmem:[%s3437_s1 + $0x244] ss:$16 sps:$4 sm:$0xff]   ;;  %v2322_v23 = vld [vmem:[%s3437_s1 + $0x240] ss:$16 sps:$4 sm:$0xff]  }
   0xd   :  { %1351 = vmatprep.subr.bf16.mxu1 %v2307_v13  ;;  %v2323_v24 = vld [vmem:[%s3437_s1 + $0x24] ss:$16 sps:$4 sm:$0xff]   ;;  %v2327_v26 = vld [vmem:[%s3437_s1 + $0x20] ss:$16 sps:$4 sm:$0xff]  }
   0xe   :  { %v2325_v25 = vld [vmem:[%s3437_s1 + $0x224] ss:$16 sps:$4 sm:$0xff]   ;;  %v2328_v27 = vld [vmem:[%s3437_s1 + $0x220] ss:$16 sps:$4 sm:$0xff]  }
   0xf   :  { %1311 = vmatpush1.bf16.msra.mxu0 %v2309_v14  ;;  %v2329_v28 = vld [vmem:[%s3437_s1 + $0x4] ss:$16 sps:$4 sm:$0xff]   ;;  %v2333_v30 = vld [vmem:[%s3437_s1] ss:$16 sps:$4 sm:$0xff]  }
  0x10   :  { %1352 = vmatpush1.bf16.msra.mxu1 %v2310_v15  ;;  %1312 = vmatprep.subr.bf16.mxu0 %v2311_v16  ;;  %v2331_v29 = vld [vmem:[%s3437_s1 + $0x204] ss:$16 sps:$4 sm:$0xff]   ;;  %v2334_v31 = vld [vmem:[%s3437_s1 + $0x200] ss:$16 sps:$4 sm:$0xff]  }
  0x11   :  { %1353 = vmatprep.subr.bf16.mxu1 %v2313_v17  ;;  %v2335_v32 = vld [vmem:[%s3437_s1 + $0x1e4] ss:$16 sps:$4 sm:$0xff]   ;;  %v2339_v34 = vld [vmem:[%s3437_s1 + $0x1e0] ss:$16 sps:$4 sm:$0xff]  }
  0x12   :  { %v2337_v33 = vld [vmem:[%s3437_s1 + $0x3e4] ss:$16 sps:$4 sm:$0xff]   ;;  %v2340_v35 = vld [vmem:[%s3437_s1 + $0x3e0] ss:$16 sps:$4 sm:$0xff]  }
  0x13   :  { %1313 = vmatpush1.bf16.msra.mxu0 %v2315_v18  ;;  %v2341_v39 = vld [vmem:[%s3437_s1 + $0x1c4] ss:$16 sps:$4 sm:$0xff]   ;;  %v2345_v41 = vld [vmem:[%s3437_s1 + $0x1c0] ss:$16 sps:$4 sm:$0xff]  }
  0x14   :  { %1354 = vmatpush1.bf16.msra.mxu1 %v2316_v19  ;;  %1314 = vmatprep.subr.bf16.mxu0 %v2317_v20  ;;  %v2343_v40 = vld [vmem:[%s3437_s1 + $0x3c4] ss:$16 sps:$4 sm:$0xff]   ;;  %v2346_v44 = vld [vmem:[%s3437_s1 + $0x3c0] ss:$16 sps:$4 sm:$0xff]  }
  0x15   :  { %1355 = vmatprep.subr.bf16.mxu1 %v2319_v21  ;;  %v2347_v45 = vld [vmem:[%s3437_s1 + $0x1a4] ss:$16 sps:$4 sm:$0xff]   ;;  %v2351_v47 = vld [vmem:[%s3437_s1 + $0x1a0] ss:$16 sps:$4 sm:$0xff]  }
  0x16   :  { %v2349_v46 = vld [vmem:[%s3437_s1 + $0x3a4] ss:$16 sps:$4 sm:$0xff]   ;;  %v2352_v48 = vld [vmem:[%s3437_s1 + $0x3a0] ss:$16 sps:$4 sm:$0xff]  }
  0x17   :  { %1315 = vmatpush1.bf16.msra.mxu0 %v2321_v22  ;;  %v2353_v50 = vld [vmem:[%s3437_s1 + $0x184] ss:$16 sps:$4 sm:$0xff]   ;;  %v2357_v53 = vld [vmem:[%s3437_s1 + $0x180] ss:$16 sps:$4 sm:$0xff]  }
  0x18   :  { %1356 = vmatpush1.bf16.msra.mxu1 %v2322_v23  ;;  %1316 = vmatprep.subr.bf16.mxu0 %v2323_v24  ;;  %v2355_v51 = vld [vmem:[%s3437_s1 + $0x384] ss:$16 sps:$4 sm:$0xff]   ;;  %v2358_v55 = vld [vmem:[%s3437_s1 + $0x380] ss:$16 sps:$4 sm:$0xff]  }
  0x19   :  { %1357 = vmatprep.subr.bf16.mxu1 %v2325_v25  ;;  %v22_v52 = vld [vmem:[%s3436_s0] sm:$0x7f] }
  0x1a   :  { %v253_v54 = vrot.slane %v22_v52, %v2810_v49  ;;  %v2359_v56 = vld [vmem:[%s3437_s1 + $0x164] ss:$16 sps:$4 sm:$0xff]   ;;  %v2363_v59 = vld [vmem:[%s3437_s1 + $0x160] ss:$16 sps:$4 sm:$0xff]   ;;  %v246_v7 = vcombine.high %v22_v52, %v22_v52  ;;  %v2429_v52 = vld [vmem:[%s3437_s1 + $0x48] ss:$16 sps:$4 sm:$0xff]  }
  0x1b   :  { %1317 = vmatpush1.bf16.msra.mxu0 %v2327_v26  ;;  %v2361_v57 = vld [vmem:[%s3437_s1 + $0x364] ss:$16 sps:$4 sm:$0xff]   ;;  %v2364_v61 = vld [vmem:[%s3437_s1 + $0x360] ss:$16 sps:$4 sm:$0xff]  }
  0x1c   :  { %1358 = vmatpush1.bf16.msra.mxu1 %v2328_v27  ;;  %1318 = vmatprep.subr.bf16.mxu0 %v2329_v28  ;;  %v261_v58 = vcombine.high %v253_v54, %v253_v54  ;;  %v2365_v62 = vld [vmem:[%s3437_s1 + $0x144] ss:$16 sps:$4 sm:$0xff]   ;;  %v2369_v1 = vld [vmem:[%s3437_s1 + $0x140] ss:$16 sps:$4 sm:$0xff]   ;;  %v2883_v11 = vrot.slane %v253_v54, %v2810_v49  ;;  %v260_v13 = vrot.slane %v246_v7, %v2810_v49  ;;  %v2401_v27 = vld [vmem:[%s3437_s1 + $0xec] ss:$16 sps:$4 sm:$0xff]  }
  0x1d   :  { %1359 = vmatprep.subr.bf16.mxu1 %v2331_v29  ;;  %v2367_v63 = vld [vmem:[%s3437_s1 + $0x344] ss:$16 sps:$4 sm:$0xff]   ;;  %v2370_v2 = vld [vmem:[%s3437_s1 + $0x340] ss:$16 sps:$4 sm:$0xff]   ;;  %v2643_v28 = vmov 0  }
  0x1e   :  { %v2838_v60 = vrot.slane %v261_v58, %v2810_v49  ;;  %v2371_v3 = vld [vmem:[%s3437_s1 + $0x124] ss:$16 sps:$4 sm:$0xff]   ;;  %v2375_v5 = vld [vmem:[%s3437_s1 + $0x120] ss:$16 sps:$4 sm:$0xff]   ;;  %v262_v16 = vcombine.high %v260_v13, %v260_v13  ;;  %v2897_v17 = vcombine.high %v2883_v11, %v2883_v11  ;;  %v2915_v23 = vrot.slane %v260_v13, %v2810_v49  ;;  %v2437_v54 = vld [vmem:[%s3437_s1 + $0x2c] ss:$16 sps:$4 sm:$0xff]  }
  0x1f   :  { %1319 = vmatpush1.bf16.msra.mxu0 %v2333_v30  ;;  %v2373_v4 = vld [vmem:[%s3437_s1 + $0x324] ss:$16 sps:$4 sm:$0xff]   ;;  %v2376_v6 = vld [vmem:[%s3437_s1 + $0x320] ss:$16 sps:$4 sm:$0xff]   ;;  %v2443_v58 = vld [vmem:[%s3437_s1 + $0xc] ss:$16 sps:$4 sm:$0xff]  }
  0x20   :  { %1360 = vmatpush1.bf16.msra.mxu1 %v2334_v31  ;;  %1320 = vmatprep.subr.bf16.mxu0 %v2335_v32  ;;  %v2851_v0 = vcombine.high %v2838_v60, %v2838_v60  ;;  %v2377_v8 = vld [vmem:[%s3437_s1 + $0x104] ss:$16 sps:$4 sm:$0xff]   ;;  %v2381_v10 = vld [vmem:[%s3437_s1 + $0x100] ss:$16 sps:$4 sm:$0xff]   ;;  %v2912_v22 = vrot.slane %v262_v16, %v2810_v49  ;;  %v2938_v30 = vcombine.high %v2915_v23, %v2915_v23  ;;  %v2399_v31 = vld [vmem:[%s3437_s1 + $0xe8] ss:$16 sps:$4 sm:$0xff]  }
  0x21   :  { %1361 = vmatprep.subr.bf16.mxu1 %v2337_v33  ;;  %1336 = vmatprep.mubr.bf16.mxu0 %v2838_v60  ;;  %v2379_v9 = vld [vmem:[%s3437_s1 + $0x304] ss:$16 sps:$4 sm:$0xff]   ;;  %v2382_v12 = vld [vmem:[%s3437_s1 + $0x300] ss:$16 sps:$4 sm:$0xff]   ;;  %v2407_v33 = vld [vmem:[%s3437_s1 + $0xcc] ss:$16 sps:$4 sm:$0xff]  }
  0x22   :  { %1377 = vmatprep.mubr.bf16.mxu1 %v2851_v0  ;;  %v2386_v14 = vld [vmem:[%s3437_s1 + $0x4e4] ss:$16 sps:$4 sm:$0xff]   ;;  %v2384_v18 = vld [vmem:[%s3437_s1 + $0x4e0] ss:$16 sps:$4 sm:$0xff]   ;;  %v2461_v7 = vld [vmem:[%s3437_s1 + $0x1ac] ss:$16 sps:$4 sm:$0xff]  }
  0x23   :  { %1321 = vmatpush2.bf16.msra.mxu0 %v2339_v34  ;;  %v2389_v15 = vld [vmem:[%s3437_s1 + $0x624] ss:$16 sps:$4 sm:$0xff]   ;;  %v2387_v19 = vld [vmem:[%s3437_s1 + $0x620] ss:$16 sps:$4 sm:$0xff]   ;;  %v2473_v16 = vld [vmem:[%s3437_s1 + $0x16c] ss:$16 sps:$4 sm:$0xff]  }
  0x24   :  { %1362 = vmatpush2.bf16.msra.mxu1 %v2340_v35  ;;  %1322 = vmatprep.subr.bf16.mxu0 %v2341_v39  ;;  %v2392_v20 = vld [vmem:[%s3437_s1 + $0x4c4] ss:$16 sps:$4 sm:$0xff]   ;;  %v2390_v24 = vld [vmem:[%s3437_s1 + $0x4c0] ss:$16 sps:$4 sm:$0xff]   ;;  %v2405_v35 = vld [vmem:[%s3437_s1 + $0xc8] ss:$16 sps:$4 sm:$0xff]  }
  0x25   :  { %1363 = vmatprep.subr.bf16.mxu1 %v2343_v40  ;;  %v2395_v21 = vld [vmem:[%s3437_s1 + $0x604] ss:$16 sps:$4 sm:$0xff]   ;;  %v2393_v25 = vld [vmem:[%s3437_s1 + $0x600] ss:$16 sps:$4 sm:$0xff]   ;;  %v2411_v39 = vld [vmem:[%s3437_s1 + $0xa8] ss:$16 sps:$4 sm:$0xff]  }
  0x26   :  { %v2398_v26 = vld [vmem:[%s3437_s1 + $0x4a4] ss:$16 sps:$4 sm:$0xff]   ;;  %v2396_v29 = vld [vmem:[%s3437_s1 + $0x4a0] ss:$16 sps:$4 sm:$0xff]  }
  0x27   :  { %1323 = vmatpush2.bf16.msra.mxu0 %v2345_v41  ;;  %v2404_v32 = vld [vmem:[%s3437_s1 + $0x484] ss:$16 sps:$4 sm:$0xff]   ;;  %v2402_v34 = vld [vmem:[%s3437_s1 + $0x480] ss:$16 sps:$4 sm:$0xff]   ;;  %v2419_v41 = vld [vmem:[%s3437_s1 + $0x8c] ss:$16 sps:$4 sm:$0xff]  }
  0x28   :  { %1364 = vmatpush2.bf16.msra.mxu1 %v2346_v44  ;;  %1324 = vmatprep.subr.bf16.mxu0 %v2347_v45  ;;  %v2410_v36 = vld [vmem:[%s3437_s1 + $0x464] ss:$16 sps:$4 sm:$0xff]   ;;  %v2408_v38 = vld [vmem:[%s3437_s1 + $0x460] ss:$16 sps:$4 sm:$0xff]   ;;  %v2417_v44 = vld [vmem:[%s3437_s1 + $0x88] ss:$16 sps:$4 sm:$0xff]  }
  0x29   :  { %1365 = vmatprep.subr.bf16.mxu1 %v2349_v46  ;;  %v2416_v40 = vld [vmem:[%s3437_s1 + $0x444] ss:$16 sps:$4 sm:$0xff]   ;;  %v2414_v43 = vld [vmem:[%s3437_s1 + $0x440] ss:$16 sps:$4 sm:$0xff]   ;;  %v2425_v46 = vld [vmem:[%s3437_s1 + $0x6c] ss:$16 sps:$4 sm:$0xff]  }
  0x2a   :  { %v2422_v45 = vld [vmem:[%s3437_s1 + $0x424] ss:$16 sps:$4 sm:$0xff]   ;;  %v2462_v13 = vld [vmem:[%s3437_s1 + $0x540] ss:$16 sps:$4 sm:$0xff]  }
  0x2b   :  { %1325 = vmatpush2.bf16.msra.mxu0 %v2351_v47  ;;  %v2420_v47 = vld [vmem:[%s3437_s1 + $0x420] ss:$16 sps:$4 sm:$0xff]   ;;  %v2428_v49 = vld [vmem:[%s3437_s1 + $0x404] ss:$16 sps:$4 sm:$0xff]  }
  0x2c   :  { %1366 = vmatpush2.bf16.msra.mxu1 %v2352_v48  ;;  %1326 = vmatprep.subr.bf16.mxu0 %v2353_v50  ;;  %v2423_v48 = vld [vmem:[%s3437_s1 + $0x68] ss:$16 sps:$4 sm:$0xff]   ;;  %v2431_v50 = vld [vmem:[%s3437_s1 + $0x4c] ss:$16 sps:$4 sm:$0xff]  }
  0x2d   :  { %1367 = vmatprep.subr.bf16.mxu1 %v2355_v51  ;;  %v2426_v51 = vld [vmem:[%s3437_s1 + $0x400] ss:$16 sps:$4 sm:$0xff]  }
  0x2f   :  { %1327 = vmatpush2.bf16.msra.mxu0 %v2357_v53  ;;  %v2434_v53 = vld [vmem:[%s3437_s1 + $0x5e4] ss:$16 sps:$4 sm:$0xff]  }
  0x30   :  { %1368 = vmatpush2.bf16.msra.mxu1 %v2358_v55  ;;  %1328 = vmatprep.subr.bf16.mxu0 %v2359_v56  ;;  %v2432_v55 = vld [vmem:[%s3437_s1 + $0x5e0] ss:$16 sps:$4 sm:$0xff]   ;;  %v2435_v56 = vld [vmem:[%s3437_s1 + $0x28] ss:$16 sps:$4 sm:$0xff]  }
  0x31   :  { %1369 = vmatprep.subr.bf16.mxu1 %v2361_v57  ;;  %v2440_v57 = vld [vmem:[%s3437_s1 + $0x5c4] ss:$16 sps:$4 sm:$0xff]  }
  0x33   :  { %1329 = vmatpush2.bf16.msra.mxu0 %v2363_v59  ;;  %v2438_v59 = vld [vmem:[%s3437_s1 + $0x5c0] ss:$16 sps:$4 sm:$0xff]  }
  0x34   :  { %1370 = vmatpush2.bf16.msra.mxu1 %v2364_v61  ;;  %1330 = vmatprep.subr.bf16.mxu0 %v2365_v62  ;;  %v2446_v61 = vld [vmem:[%s3437_s1 + $0x5a4] ss:$16 sps:$4 sm:$0xff]   ;;  %v2449_v62 = vld [vmem:[%s3437_s1 + $0x1ec] ss:$16 sps:$4 sm:$0xff]  }
  0x35   :  { %1371 = vmatprep.subr.bf16.mxu1 %v2367_v63  ;;  %v2444_v63 = vld [vmem:[%s3437_s1 + $0x5a0] ss:$16 sps:$4 sm:$0xff]  }
  0x37   :  { %1331 = vmatpush2.bf16.msra.mxu0 %v2369_v1  ;;  %v2447_v1 = vld [vmem:[%s3437_s1 + $0x1e8] ss:$16 sps:$4 sm:$0xff]  }
  0x38   :  { %1372 = vmatpush2.bf16.msra.mxu1 %v2370_v2  ;;  %1332 = vmatprep.subr.bf16.mxu0 %v2371_v3  ;;  %v2452_v2 = vld [vmem:[%s3437_s1 + $0x584] ss:$16 sps:$4 sm:$0xff]   ;;  %v2455_v3 = vld [vmem:[%s3437_s1 + $0x1cc] ss:$16 sps:$4 sm:$0xff]  }
  0x39   :  { %1373 = vmatprep.subr.bf16.mxu1 %v2373_v4  ;;  %v2450_v4 = vld [vmem:[%s3437_s1 + $0x580] ss:$16 sps:$4 sm:$0xff]  }
  0x3b   :  { %1333 = vmatpush2.bf16.msra.mxu0 %v2375_v5  ;;  %v2453_v5 = vld [vmem:[%s3437_s1 + $0x1c8] ss:$16 sps:$4 sm:$0xff]  }
  0x3c   :  { %1374 = vmatpush2.bf16.msra.mxu1 %v2376_v6  ;;  %1334 = vmatprep.subr.bf16.mxu0 %v2377_v8  ;;  %v2458_v6 = vld [vmem:[%s3437_s1 + $0x564] ss:$16 sps:$4 sm:$0xff]   ;;  %v2456_v8 = vld [vmem:[%s3437_s1 + $0x560] ss:$16 sps:$4 sm:$0xff]  }
  0x3d   :  { %1375 = vmatprep.subr.bf16.mxu1 %v2379_v9  ;;  %v2459_v9 = vld [vmem:[%s3437_s1 + $0x1a8] ss:$16 sps:$4 sm:$0xff]  }
  0x3f   :  { %1335 = vmatpush2.bf16.msra.mxu0 %v2381_v10  ;;  %v2464_v10 = vld [vmem:[%s3437_s1 + $0x544] ss:$16 sps:$4 sm:$0xff]  }
  0x40   :  { %1376 = vmatpush2.bf16.msra.mxu1 %v2382_v12  ;;  %1386 = vmatprep.subr.bf16.mxu0 %v2386_v14  ;;  %v2467_v12 = vld [vmem:[%s3437_s1 + $0x18c] ss:$16 sps:$4 sm:$0xff]   ;;  %v2465_v14 = vld [vmem:[%s3437_s1 + $0x188] ss:$16 sps:$4 sm:$0xff]  }
  0x41   :  { %1439 = vmatprep.subr.bf16.mxu1 %v2389_v15  ;;  %v2470_v15 = vld [vmem:[%s3437_s1 + $0x524] ss:$16 sps:$4 sm:$0xff]  }
  0x42   :  { %1337 = vmatmul.mubr.bf16.vlgmr.msra.gmra.mxu0 %v2883_v11 }
  0x43   :  { %1378 = vmatmul.mubr.bf16.vlgmr.msra.gmra.mxu1 %v2897_v17  ;;  %1387 = vmatpush1.bf16.msra.mxu0 %v2384_v18  ;;  %v2468_v18 = vld [vmem:[%s3437_s1 + $0x520] ss:$16 sps:$4 sm:$0xff]  }
  0x44   :  { %1440 = vmatpush1.bf16.msra.mxu1 %v2387_v19  ;;  %1388 = vmatprep.subr.bf16.mxu0 %v2392_v20  ;;  %v2471_v19 = vld [vmem:[%s3437_s1 + $0x168] ss:$16 sps:$4 sm:$0xff]   ;;  %v2476_v20 = vld [vmem:[%s3437_s1 + $0x504] ss:$16 sps:$4 sm:$0xff]  }
  0x45   :  { %1441 = vmatprep.subr.bf16.mxu1 %v2395_v21  ;;  %1459 = vmatprep.mubr.bf16.mxu1 %v2643_v28  ;;  %v2479_v21 = vld [vmem:[%s3437_s1 + $0x14c] ss:$16 sps:$4 sm:$0xff]  }
  0x46   :  { %1418 = vmatprep.mubr.bf16.mxu0 %v2912_v22 }
  0x47   :  { %1389 = vmatpush1.bf16.msra.mxu0 %v2390_v24  ;;  %v2474_v24 = vld [vmem:[%s3437_s1 + $0x500] ss:$16 sps:$4 sm:$0xff]  }
  0x48   :  { %1442 = vmatpush1.bf16.msra.mxu1 %v2393_v25  ;;  %1390 = vmatprep.subr.bf16.mxu0 %v2398_v26  ;;  %v2477_v25 = vld [vmem:[%s3437_s1 + $0x148] ss:$16 sps:$4 sm:$0xff]   ;;  %v2482_v26 = vld [vmem:[%s3437_s1 + $0x12c] ss:$16 sps:$4 sm:$0xff]  }
  0x49   :  { %1468 = vmatprep.subr.bf16.mxu1 %v2401_v27  ;;  %v2485_v27 = vld [vmem:[%s3437_s1 + $0x2ec] ss:$16 sps:$4 sm:$0xff]  }
  0x4b   :  { %2203 = vmatmul.mubr.msk.bf16.vlgmr.msra.gmra.mxu1 %vm1300_vm0, %v2938_v30  ;;  %1391 = vmatpush1.bf16.msra.mxu0 %v2396_v29  ;;  %v2480_v29 = vld [vmem:[%s3437_s1 + $0x128] ss:$16 sps:$4 sm:$0xff]  }
  0x4c   :  { %1469 = vmatpush1.bf16.msra.mxu1 %v2399_v31  ;;  %1392 = vmatprep.subr.bf16.mxu0 %v2404_v32  ;;  %v2483_v31 = vld [vmem:[%s3437_s1 + $0x2e8] ss:$16 sps:$4 sm:$0xff]   ;;  %v2488_v32 = vld [vmem:[%s3437_s1 + $0x10c] ss:$16 sps:$4 sm:$0xff]  }
  0x4d   :  { %1470 = vmatprep.subr.bf16.mxu1 %v2407_v33  ;;  %1500 = vmatprep.mubr.bf16.mxu1 %v2838_v60  ;;  %v2441_v60 = vld [vmem:[%s3437_s1 + $0x8] ss:$16 sps:$4 sm:$0xff]   ;;  %v2491_v33 = vld [vmem:[%s3437_s1 + $0x2cc] ss:$16 sps:$4 sm:$0xff]  }
  0x4f   :  { %1393 = vmatpush1.bf16.msra.mxu0 %v2402_v34  ;;  %v2486_v34 = vld [vmem:[%s3437_s1 + $0x108] ss:$16 sps:$4 sm:$0xff]  }
  0x50   :  { %1471 = vmatpush1.bf16.msra.mxu1 %v2405_v35  ;;  %1394 = vmatprep.subr.bf16.mxu0 %v2410_v36  ;;  %v2489_v35 = vld [vmem:[%s3437_s1 + $0x2c8] ss:$16 sps:$4 sm:$0xff]   ;;  %v2494_v36 = vld [vmem:[%s3437_s1 + $0x2ac] ss:$16 sps:$4 sm:$0xff]  }
  0x51   :  { %1472 = vmatprep.subr.bf16.mxu1 %v2413_v37  ;;  %v2497_v37 = vld [vmem:[%s3437_s1 + $0x4ec] ss:$16 sps:$4 sm:$0xff]  }
  0x53   :  { %1395 = vmatpush1.bf16.msra.mxu0 %v2408_v38  ;;  %v2492_v38 = vld [vmem:[%s3437_s1 + $0x2a8] ss:$16 sps:$4 sm:$0xff]  }
  0x54   :  { %1473 = vmatpush1.bf16.msra.mxu1 %v2411_v39  ;;  %1396 = vmatprep.subr.bf16.mxu0 %v2416_v40  ;;  %v2495_v39 = vld [vmem:[%s3437_s1 + $0x4e8] ss:$16 sps:$4 sm:$0xff]   ;;  %v2500_v40 = vld [vmem:[%s3437_s1 + $0x28c] ss:$16 sps:$4 sm:$0xff]  }
  0x55   :  { %1474 = vmatprep.subr.bf16.mxu1 %v2419_v41  ;;  %v2503_v41 = vld [vmem:[%s3437_s1 + $0x4cc] ss:$16 sps:$4 sm:$0xff]  }
  0x57   :  { %1397 = vmatpush1.bf16.msra.mxu0 %v2414_v43  ;;  %v2498_v43 = vld [vmem:[%s3437_s1 + $0x288] ss:$16 sps:$4 sm:$0xff]  }
  0x58   :  { %1475 = vmatpush1.bf16.msra.mxu1 %v2417_v44  ;;  %1398 = vmatprep.subr.bf16.mxu0 %v2422_v45  ;;  %v2506_v44 = vld [vmem:[%s3437_s1 + $0x26c] ss:$16 sps:$4 sm:$0xff]  }
  0x59   :  { %1476 = vmatprep.subr.bf16.mxu1 %v2425_v46  ;;  %v2509_v45 = vld [vmem:[%s3437_s1 + $0x4ac] ss:$16 sps:$4 sm:$0xff]   ;;  %v2504_v46 = vld [vmem:[%s3437_s1 + $0x268] ss:$16 sps:$4 sm:$0xff]  }
  0x5b   :  { %1399 = vmatpush1.bf16.msra.mxu0 %v2420_v47  ;;  %v2512_v47 = vld [vmem:[%s3437_s1 + $0x24c] ss:$16 sps:$4 sm:$0xff]  }
  0x5c   :  { %1477 = vmatpush1.bf16.msra.mxu1 %v2423_v48  ;;  %1400 = vmatprep.subr.bf16.mxu0 %v2428_v49  ;;  %v2515_v48 = vld [vmem:[%s3437_s1 + $0x48c] ss:$16 sps:$4 sm:$0xff]   ;;  %v2510_v49 = vld [vmem:[%s3437_s1 + $0x248] ss:$16 sps:$4 sm:$0xff]  }
  0x5d   :  { %1478 = vmatprep.subr.bf16.mxu1 %v2431_v50  ;;  %v2518_v50 = vld [vmem:[%s3437_s1 + $0x22c] ss:$16 sps:$4 sm:$0xff]  }
  0x5f   :  { %1401 = vmatpush1.bf16.msra.mxu0 %v2426_v51  ;;  %v2521_v51 = vld [vmem:[%s3437_s1 + $0x46c] ss:$16 sps:$4 sm:$0xff]  }
  0x60   :  { %1479 = vmatpush1.bf16.msra.mxu1 %v2429_v52  ;;  %1402 = vmatprep.subr.bf16.mxu0 %v2434_v53  ;;  %v2516_v52 = vld [vmem:[%s3437_s1 + $0x228] ss:$16 sps:$4 sm:$0xff]  }
  0x61   :  { %1480 = vmatprep.subr.bf16.mxu1 %v2437_v54  ;;  %v2519_v53 = vld [vmem:[%s3437_s1 + $0x468] ss:$16 sps:$4 sm:$0xff]   ;;  %v2524_v54 = vld [vmem:[%s3437_s1 + $0x20c] ss:$16 sps:$4 sm:$0xff]  }
  0x63   :  { %1403 = vmatpush2.bf16.msra.mxu0 %v2432_v55  ;;  %v2527_v55 = vld [vmem:[%s3437_s1 + $0x44c] ss:$16 sps:$4 sm:$0xff]  }
  0x64   :  { %1481 = vmatpush1.bf16.msra.mxu1 %v2435_v56  ;;  %1404 = vmatprep.subr.bf16.mxu0 %v2440_v57  ;;  %v2522_v56 = vld [vmem:[%s3437_s1 + $0x208] ss:$16 sps:$4 sm:$0xff]  }
  0x65   :  { %1482 = vmatprep.subr.bf16.mxu1 %v2443_v58  ;;  %v2525_v57 = vld [vmem:[%s3437_s1 + $0x448] ss:$16 sps:$4 sm:$0xff]   ;;  %v2530_v58 = vld [vmem:[%s3437_s1 + $0x3ec] ss:$16 sps:$4 sm:$0xff]  }
  0x67   :  { %1405 = vmatpush2.bf16.msra.mxu0 %v2438_v59  ;;  %v2533_v59 = vld [vmem:[%s3437_s1 + $0x42c] ss:$16 sps:$4 sm:$0xff]  }
  0x68   :  { %1483 = vmatpush1.bf16.msra.mxu1 %v2441_v60  ;;  %1406 = vmatprep.subr.bf16.mxu0 %v2446_v61 }
  0x69   :  { %1484 = vmatprep.subr.bf16.mxu1 %v2449_v62 }
  0x6b   :  { %1407 = vmatpush2.bf16.msra.mxu0 %v2444_v63 }
  0x6c   :  { %1485 = vmatpush2.bf16.msra.mxu1 %v2447_v1  ;;  %1408 = vmatprep.subr.bf16.mxu0 %v2452_v2 }
  0x6d   :  { %1486 = vmatprep.subr.bf16.mxu1 %v2455_v3 }
  0x6f   :  { %1409 = vmatpush2.bf16.msra.mxu0 %v2450_v4 }
  0x70   :  { %1487 = vmatpush2.bf16.msra.mxu1 %v2453_v5  ;;  %1410 = vmatprep.subr.bf16.mxu0 %v2458_v6 }
  0x71   :  { %1488 = vmatprep.subr.bf16.mxu1 %v2461_v7 }
  0x73   :  { %1411 = vmatpush2.bf16.msra.mxu0 %v2456_v8 }
  0x74   :  { %1489 = vmatpush2.bf16.msra.mxu1 %v2459_v9  ;;  %1412 = vmatprep.subr.bf16.mxu0 %v2464_v10 }
  0x75   :  { %1490 = vmatprep.subr.bf16.mxu1 %v2467_v12 }
  0x77   :  { %1413 = vmatpush2.bf16.msra.mxu0 %v2462_v13 }
  0x78   :  { %1491 = vmatpush2.bf16.msra.mxu1 %v2465_v14  ;;  %1414 = vmatprep.subr.bf16.mxu0 %v2470_v15 }
  0x79   :  { %1492 = vmatprep.subr.bf16.mxu1 %v2473_v16 }
  0x7b   :  { %1415 = vmatpush2.bf16.msra.mxu0 %v2468_v18 }
  0x7c   :  { %1493 = vmatpush2.bf16.msra.mxu1 %v2471_v19  ;;  %1416 = vmatprep.subr.bf16.mxu0 %v2476_v20 }
  0x7d   :  { %1494 = vmatprep.subr.bf16.mxu1 %v2479_v21 }
  0x7f   :  { %1417 = vmatpush2.bf16.msra.mxu0 %v2474_v24 }
  0x80   :  { %1495 = vmatpush2.bf16.msra.mxu1 %v2477_v25  ;;  %1509 = vmatprep.subr.bf16.mxu0 %v2485_v27 }
  0x81   :  { %1496 = vmatprep.subr.bf16.mxu1 %v2482_v26 }
  0x82   :  { %1419 = vmatmul.mubr.bf16.vlgmr.msra.gmra.mxu0 %v2915_v23 }
  0x83   :  { %1510 = vmatpush1.bf16.msra.mxu0 %v2483_v31  ;;  %1541 = vmatprep.mubr.bf16.mxu0 %v2851_v0  ;;  %v2501_v0 = vld [vmem:[%s3437_s1 + $0x4c8] ss:$16 sps:$4 sm:$0xff]  }
  0x84   :  { %1497 = vmatpush2.bf16.msra.mxu1 %v2480_v29  ;;  %1511 = vmatprep.subr.bf16.mxu0 %v2491_v33 }
  0x85   :  { %1498 = vmatprep.subr.bf16.mxu1 %v2488_v32 }
  0x87   :  { %1512 = vmatpush1.bf16.msra.mxu0 %v2489_v35 }
  0x88   :  { %1499 = vmatpush2.bf16.msra.mxu1 %v2486_v34  ;;  %1513 = vmatprep.subr.bf16.mxu0 %v2494_v36 }
  0x89   :  { %1550 = vmatprep.subr.bf16.mxu1 %v2497_v37 }
  0x8b   :  { %1501 = vmatmul.mubr.bf16.vlgmr.msra.gmra.mxu1 %v2883_v11  ;;  %1514 = vmatpush1.bf16.msra.mxu0 %v2492_v38  ;;  %v2507_v11 = vld [vmem:[%s3437_s1 + $0x4a8] ss:$16 sps:$4 sm:$0xff]  }
  0x8c   :  { %1551 = vmatpush1.bf16.msra.mxu1 %v2495_v39  ;;  %1515 = vmatprep.subr.bf16.mxu0 %v2500_v40 }
  0x8d   :  { %1552 = vmatprep.subr.bf16.mxu1 %v2503_v41  ;;  %1582 = vmatprep.mubr.bf16.mxu1 %v2912_v22  ;;  %v2513_v22 = vld [vmem:[%s3437_s1 + $0x488] ss:$16 sps:$4 sm:$0xff]  }
  0x8f   :  { %1516 = vmatpush1.bf16.msra.mxu0 %v2498_v43 }
  0x90   :  { %1553 = vmatpush1.bf16.msra.mxu1 %v2501_v0  ;;  %1517 = vmatprep.subr.bf16.mxu0 %v2506_v44 }
  0x91   :  { %1554 = vmatprep.subr.bf16.mxu1 %v2509_v45 }
  0x93   :  { %1518 = vmatpush1.bf16.msra.mxu0 %v2504_v46 }
  0x94   :  { %1555 = vmatpush1.bf16.msra.mxu1 %v2507_v11  ;;  %1519 = vmatprep.subr.bf16.mxu0 %v2512_v47 }
  0x95   :  { %1556 = vmatprep.subr.bf16.mxu1 %v2515_v48 }
  0x97   :  { %1520 = vmatpush1.bf16.msra.mxu0 %v2510_v49 }
  0x98   :  { %1557 = vmatpush1.bf16.msra.mxu1 %v2513_v22  ;;  %1521 = vmatprep.subr.bf16.mxu0 %v2518_v50 }
  0x99   :  { %1558 = vmatprep.subr.bf16.mxu1 %v2521_v51 }
  0x9b   :  { %1522 = vmatpush1.bf16.msra.mxu0 %v2516_v52 }
  0x9c   :  { %1559 = vmatpush1.bf16.msra.mxu1 %v2519_v53  ;;  %1523 = vmatprep.subr.bf16.mxu0 %v2524_v54 }
  0x9d   :  { %1560 = vmatprep.subr.bf16.mxu1 %v2527_v55 }
  0x9e   :  { %10 = vsyncpa [#allocation3], 0  ;;  %v2528_v60 = vld [vmem:[%s3437_s1 + $0x3e8] ss:$16 sps:$4 sm:$0xff]   ;;  %v2536_v62 = vld [vmem:[%s3437_s1 + $0x3cc] ss:$16 sps:$4 sm:$0xff]  }
  0x9f   :  { %1524 = vmatpush1.bf16.msra.mxu0 %v2522_v56  ;;  %v2531_v61 = vld [vmem:[%s3437_s1 + $0x428] ss:$16 sps:$4 sm:$0xff]   ;;  %v2539_v63 = vld [vmem:[%s3437_s1 + $0x40c] ss:$16 sps:$4 sm:$0xff]   ;;  %v2590_v43 = vld [vmem:[%s3439_s3 + $0x70] sm:$0xff]   ;;  %vm1903_vm1 = vcmask 1041408  }
  0xa0   :  { %1561 = vmatpush1.bf16.msra.mxu1 %v2525_v57  ;;  %1525 = vmatprep.subr.bf16.mxu0 %v2530_v58  ;;  %v2534_v1 = vld [vmem:[%s3437_s1 + $0x3c8] ss:$16 sps:$4 sm:$0xff]   ;;  %v2542_v3 = vld [vmem:[%s3437_s1 + $0x3ac] ss:$16 sps:$4 sm:$0xff]   ;;  %v2606_v46 = vld [vmem:[%s3439_s3 + $0xf0] sm:$0xff]   ;;  %vm1899_vm2 = vcmask 949248  }
  0xa1   :  { %1562 = vmatprep.subr.bf16.mxu1 %v2533_v59  ;;  %v2537_v2 = vld [vmem:[%s3437_s1 + $0x408] ss:$16 sps:$4 sm:$0xff]   ;;  %v2545_v4 = vld [vmem:[%s3437_s1 + $0x5ec] ss:$16 sps:$4 sm:$0xff]   ;;  %v2595_v11 = vld [vmem:[%s3439_s3 + $0x20] sm:$0xff]   ;;  %s2644_s0 = smov [#allocation2]  }
  0xa2   :  { %v2540_v5 = vld [vmem:[%s3437_s1 + $0x3a8] ss:$16 sps:$4 sm:$0xff]   ;;  %v2548_v7 = vld [vmem:[%s3437_s1 + $0x38c] ss:$16 sps:$4 sm:$0xff]   ;;  %v2607_v47 = vld [vmem:[%s3439_s3 + $0xb0] sm:$0xff]   ;;  %s1995_s19 = sshll.u32 %s2644_s0, 4  ;;  %s1996_s19 = int_to_ptr.vmem [resolvable:$true] %s1995_s19 }
  0xa3   :  { %1526 = vmatpush2.bf16.msra.mxu0 %v2528_v60  ;;  %v2543_v6 = vld [vmem:[%s3437_s1 + $0x5e8] ss:$16 sps:$4 sm:$0xff]   ;;  %v2551_v8 = vld [vmem:[%s3437_s1 + $0x5cc] ss:$16 sps:$4 sm:$0xff]   ;;  %v2598_v51 = vld [vmem:[%s3439_s3 + $0x50] sm:$0xff]   ;;  %vm1987_vm3 = vcmask 74752   ;;  %p2625_p1 = scmp.lt.s32.totalorder %s1996_s19, %s1996_s19 }
  0xa4   :  { %1563 = vmatpush1.bf16.msra.mxu1 %v2531_v61  ;;  %1527 = vmatprep.subr.bf16.mxu0 %v2536_v62  ;;  %v2546_v9 = vld [vmem:[%s3437_s1 + $0x388] ss:$16 sps:$4 sm:$0xff]   ;;  %v2554_v12 = vld [vmem:[%s3437_s1 + $0x36c] ss:$16 sps:$4 sm:$0xff]   ;;  %v2599_v52 = vld [vmem:[%s3439_s3 + $0x10] sm:$0xff]   ;;  %s2620_s20 = scalar_lea.vmem %s1996_s19, 32 }
  0xa5   :  { %1564 = vmatprep.subr.bf16.mxu1 %v2539_v63  ;;  %v2549_v10 = vld [vmem:[%s3437_s1 + $0x5c8] ss:$16 sps:$4 sm:$0xff]   ;;  %v2557_v13 = vld [vmem:[%s3437_s1 + $0x5ac] ss:$16 sps:$4 sm:$0xff]   ;;  %v2602_v55 = vld [vmem:[%s3439_s3 + $0x40] sm:$0xff]   ;;  %p2621_p0 = scmp.ne.s32.totalorder %s1996_s19, %s2620_s20  ;;  %p2626_p2 = scmp.lt.s32.totalorder %s2620_s20, %s2620_s20 }
  0xa6   :  { %v2552_v14 = vld [vmem:[%s3437_s1 + $0x368] ss:$16 sps:$4 sm:$0xff]   ;;  %v2560_v16 = vld [vmem:[%s3437_s1 + $0x34c] ss:$16 sps:$4 sm:$0xff]   ;;  %v2603_v56 = vld [vmem:[%s3439_s3] sm:$0xff]  }
  0xa7   :  { %1528 = vmatpush2.bf16.msra.mxu0 %v2534_v1  ;;  %v2555_v15 = vld [vmem:[%s3437_s1 + $0x5a8] ss:$16 sps:$4 sm:$0xff]   ;;  %v2563_v18 = vld [vmem:[%s3437_s1 + $0x58c] ss:$16 sps:$4 sm:$0xff]   ;;  %v2610_v57 = vld [vmem:[%s3439_s3 + $0xe0] sm:$0xff]   ;;  %p2627_p3 = por %p2626_p2, %p2625_p1 }
  0xa8   :  { %1565 = vmatpush1.bf16.msra.mxu1 %v2537_v2  ;;  %1529 = vmatprep.subr.bf16.mxu0 %v2542_v3  ;;  %v2558_v19 = vld [vmem:[%s3437_s1 + $0x348] ss:$16 sps:$4 sm:$0xff]   ;;  %v2566_v21 = vld [vmem:[%s3437_s1 + $0x32c] ss:$16 sps:$4 sm:$0xff]   ;;  %v2611_v58 = vld [vmem:[%s3439_s3 + $0xa0] sm:$0xff]  }
  0xa9   :  { %1566 = vmatprep.subr.bf16.mxu1 %v2545_v4  ;;  %v2561_v20 = vld [vmem:[%s3437_s1 + $0x588] ss:$16 sps:$4 sm:$0xff]   ;;  %v2569_v24 = vld [vmem:[%s3437_s1 + $0x56c] ss:$16 sps:$4 sm:$0xff]   ;;  %p2628_p4 = pnand %p2627_p3, %p2621_p0 }
  0xaa   :  { %v2564_v25 = vld [vmem:[%s3437_s1 + $0x328] ss:$16 sps:$4 sm:$0xff]   ;;  %v2572_v27 = vld [vmem:[%s3437_s1 + $0x30c] ss:$16 sps:$4 sm:$0xff]  }
  0xab   :  { %1530 = vmatpush2.bf16.msra.mxu0 %v2540_v5  ;;  %v2567_v26 = vld [vmem:[%s3437_s1 + $0x568] ss:$16 sps:$4 sm:$0xff]   ;;  %v2575_v29 = vld [vmem:[%s3437_s1 + $0x54c] ss:$16 sps:$4 sm:$0xff]  }
  0xac   :  { %1567 = vmatpush2.bf16.msra.mxu1 %v2543_v6  ;;  %1531 = vmatprep.subr.bf16.mxu0 %v2548_v7  ;;  %v2570_v31 = vld [vmem:[%s3437_s1 + $0x308] ss:$16 sps:$4 sm:$0xff]   ;;  %v2578_v33 = vld [vmem:[%s3437_s1 + $0x52c] ss:$16 sps:$4 sm:$0xff]   ;;  %v2614_v6 = vld [vmem:[%s3439_s3 + $0xd0] sm:$0xff]  }
  0xad   :  { %1568 = vmatprep.subr.bf16.mxu1 %v2551_v8  ;;  %v2573_v32 = vld [vmem:[%s3437_s1 + $0x548] ss:$16 sps:$4 sm:$0xff]   ;;  %v2581_v34 = vld [vmem:[%s3437_s1 + $0x62c] ss:$16 sps:$4 sm:$0xff]   ;;  %v2615_v7 = vld [vmem:[%s3439_s3 + $0x90] sm:$0xff]  }
  0xae   :  { %v2576_v35 = vld [vmem:[%s3437_s1 + $0x528] ss:$16 sps:$4 sm:$0xff]   ;;  %v2584_v37 = vld [vmem:[%s3437_s1 + $0x50c] ss:$16 sps:$4 sm:$0xff]  }
  0xaf   :  { %1532 = vmatpush2.bf16.msra.mxu0 %v2546_v9  ;;  %v2579_v36 = vld [vmem:[%s3437_s1 + $0x628] ss:$16 sps:$4 sm:$0xff]   ;;  %v2587_v38 = vld [vmem:[%s3437_s1 + $0x60c] ss:$16 sps:$4 sm:$0xff]  }
  0xb0   :  { %1569 = vmatpush2.bf16.msra.mxu1 %v2549_v10  ;;  %1533 = vmatprep.subr.bf16.mxu0 %v2554_v12  ;;  %v2582_v39 = vld [vmem:[%s3437_s1 + $0x508] ss:$16 sps:$4 sm:$0xff]  }
  0xb1   :  { %1570 = vmatprep.subr.bf16.mxu1 %v2557_v13  ;;  %v2585_v40 = vld [vmem:[%s3437_s1 + $0x608] ss:$16 sps:$4 sm:$0xff]  }
  0xb2   :  { %v2588_v41 = vld [vmem:[%s3439_s3 + $0x78] sm:$0xff]   ;;  %v2592_v0 = vld [vmem:[%s3439_s3 + $0x68] sm:$0xff]  }
  0xb3   :  { %1534 = vmatpush2.bf16.msra.mxu0 %v2552_v14  ;;  %v2593_v44 = vld [vmem:[%s3439_s3 + $0x28] sm:$0xff]   ;;  %v2605_v45 = vld [vmem:[%s3439_s3 + $0xb8] sm:$0xff]  }
  0xb4   :  { %1571 = vmatpush2.bf16.msra.mxu1 %v2555_v15  ;;  %1535 = vmatprep.subr.bf16.mxu0 %v2560_v16  ;;  %v2596_v48 = vld [vmem:[%s3439_s3 + $0x58] sm:$0xff]   ;;  %v2608_v49 = vld [vmem:[%s3439_s3 + $0xe8] sm:$0xff]   ;;  %v2618_v15 = vld [vmem:[%s3439_s3 + $0xc0] sm:$0xff]  }
  0xb5   :  { %1572 = vmatprep.subr.bf16.mxu1 %v2563_v18  ;;  %v2597_v22 = vld [vmem:[%s3439_s3 + $0x18] sm:$0xff]   ;;  %v2609_v50 = vld [vmem:[%s3439_s3 + $0xa8] sm:$0xff]   ;;  %v2619_v16 = vld [vmem:[%s3439_s3 + $0x80] sm:$0xff]   ;;  %v227_v18 = vsub.s32 0, %v2792_v42 }
  0xb6   :  { %v2600_v53 = vld [vmem:[%s3439_s3 + $0x48] sm:$0xff]   ;;  %v2612_v63 = vld [vmem:[%s3439_s3 + $0xd8] sm:$0xff]  }
  0xb7   :  { %1536 = vmatpush2.bf16.msra.mxu0 %v2558_v19  ;;  %v2601_v54 = vld [vmem:[%s3439_s3 + $0x8] sm:$0xff]   ;;  %v2613_v1 = vld [vmem:[%s3439_s3 + $0x98] sm:$0xff]   ;;  %v223_v19 = vld [vmem:[%s3438_s2] sm:$0xf] }
  0xb8   :  { %1573 = vmatpush2.bf16.msra.mxu1 %v2561_v20  ;;  %1537 = vmatprep.subr.bf16.mxu0 %v2566_v21  ;;  %v2616_v10 = vld [vmem:[%s3439_s3 + $0xc8] sm:$0xff]   ;;  %v231_v20 = vsub.s32 1, %v2792_v42  ;;  %v228_v21 = vrot.slane %v223_v19, %v227_v18 }
  0xb9   :  { %1574 = vmatprep.subr.bf16.mxu1 %v2569_v24  ;;  %v2617_v12 = vld [vmem:[%s3439_s3 + $0x88] sm:$0xff]  }
  0xba   :  { %v232_v24 = vrot.slane %v223_v19, %v231_v20 }
  0xbb   :  { %1538 = vmatpush2.bf16.msra.mxu0 %v2564_v25 }
  0xbc   :  { %1575 = vmatpush2.bf16.msra.mxu1 %v2567_v26  ;;  %1539 = vmatprep.subr.bf16.mxu0 %v2572_v27 }
  0xbd   :  { %1576 = vmatprep.subr.bf16.mxu1 %v2575_v29 }
  0xbf   :  { %1540 = vmatpush2.bf16.msra.mxu0 %v2570_v31 }
  0xc0   :  { %1577 = vmatpush2.bf16.msra.mxu1 %v2573_v32  ;;  %1603 = vmatprep.subr.bf16.mxu0 %v2581_v34 }
  0xc1   :  { %1578 = vmatprep.subr.bf16.mxu1 %v2578_v33 }
  0xc2   :  { %1542 = vmatmul.mubr.bf16.vlgmr.msra.gmra.mxu0 %v2897_v17  ;;  %v2589_v17 = vld [vmem:[%s3439_s3 + $0x38] sm:$0xff]  }
  0xc3   :  { %1604 = vmatpush1.bf16.msra.mxu0 %v2579_v36  ;;  %1623 = vmatprep.mubr.bf16.mxu0 %v2643_v28  ;;  %v2591_v28 = vld [vmem:[%s3439_s3 + $0x30] sm:$0xff]  }
  0xc4   :  { %1579 = vmatpush2.bf16.msra.mxu1 %v2576_v35  ;;  %1605 = vmatprep.subr.bf16.mxu0 %v2587_v38 }
  0xc5   :  { %1580 = vmatprep.subr.bf16.mxu1 %v2584_v37 }
  0xc7   :  { %1606 = vmatpush1.bf16.msra.mxu0 %v2585_v40 }
  0xc8   :  { %1581 = vmatpush2.bf16.msra.mxu1 %v2582_v39  ;;  %2239 = vmatprep.subr.bf16.mxu0 %v2588_v41 }
  0xca   :  { %2204 = vmatmul.mubr.msk.bf16.vlgmr.msra.gmra.mxu0 %vm1300_vm0, %v2938_v30  ;;  %v2604_v30 = vld [vmem:[%s3439_s3 + $0xf8] ss:$0 sps:$4 sm:$0x33]  }
  0xcb   :  { %1583 = vmatmul.mubr.bf16.vlgmr.msra.gmra.mxu1 %v2915_v23  ;;  %2240 = vmatpush3.bf16.msra.mxu0 %v2589_v17  ;;  %v2594_v23 = vld [vmem:[%s3439_s3 + $0x60] sm:$0xff]  }
  0xcc   :  { %2241 = vmatprep.subr.bf16.mxu0 %v2590_v43  ;;  %2283 = vmatprep.subr.msk.bf16.mxu1 %vm1903_vm1, %v2604_v30  ;;  %v239_v30 = vsub.s32 3, %v2792_v42 }
  0xcd   :  { %2262 = vmatpush3.bf16.msra.mxu1 %v2605_v45 }
  0xce   :  { %2263 = vmatprep.subr.bf16.mxu1 %v2606_v46 }
  0xcf   :  { %2242 = vmatpush3.bf16.msra.mxu0 %v2591_v28 }
  0xd0   :  { %2243 = vmatprep.subr.bf16.mxu0 %v2592_v0 }
  0xd1   :  { %2264 = vmatpush3.bf16.msra.mxu1 %v2607_v47  ;;  %v240_v47 = vrot.slane %v223_v19, %v239_v30 }
  0xd2   :  { %2265 = vmatprep.subr.bf16.mxu1 %v2608_v49 }
  0xd3   :  { %2244 = vmatpush3.bf16.msra.mxu0 %v2593_v44 }
  0xd4   :  { %2245 = vmatprep.subr.bf16.mxu0 %v2594_v23  ;;  %v235_v23 = vsub.s32 2, %v2792_v42 }
  0xd5   :  { %2266 = vmatpush3.bf16.msra.mxu1 %v2609_v50 }
  0xd6   :  { %2267 = vmatprep.subr.bf16.mxu1 %v2610_v57  ;;  %v236_v46 = vrot.slane %v223_v19, %v235_v23 }
  0xd7   :  { %2246 = vmatpush3.bf16.msra.mxu0 %v2595_v11 }
  0xd8   :  { %2247 = vmatprep.subr.bf16.mxu0 %v2596_v48 }
  0xd9   :  { %2268 = vmatpush3.bf16.msra.mxu1 %v2611_v58 }
  0xda   :  { %2269 = vmatprep.subr.bf16.mxu1 %v2612_v63 }
  0xdb   :  { %2248 = vmatpush3.bf16.msra.mxu0 %v2597_v22 }
  0xdc   :  { %2249 = vmatprep.subr.bf16.mxu0 %v2598_v51 }
  0xdd   :  { %2270 = vmatpush3.bf16.msra.mxu1 %v2613_v1 }
  0xde   :  { %2271 = vmatprep.subr.bf16.mxu1 %v2614_v6 }
  0xdf   :  { %2250 = vmatpush3.bf16.msra.mxu0 %v2599_v52 }
  0xe0   :  { %2251 = vmatprep.subr.bf16.mxu0 %v2600_v53 }
  0xe1   :  { %2272 = vmatpush3.bf16.msra.mxu1 %v2615_v7 }
  0xe2   :  { %2273 = vmatprep.subr.bf16.mxu1 %v2616_v10  ;;  %v2205_v10 = vld [vmem:[%s3440_s4] ss:$0 sm:$0xff] }
  0xe3   :  { %2252 = vmatpush3.bf16.msra.mxu0 %v2601_v54 }
  0xe4   :  { %2253 = vmatprep.subr.bf16.mxu0 %v2602_v55 }
  0xe5   :  { %2274 = vmatpush3.bf16.msra.mxu1 %v2617_v12 }
  0xe6   :  { %2275 = vmatprep.subr.bf16.mxu1 %v2618_v15 }
  0xe7   :  { %2254 = vmatpush3.bf16.msra.mxu0 %v2603_v56 }
  0xe9   :  { %2276 = vmatpush3.bf16.msra.mxu1 %v2619_v16 }
 0x102   :  { %v1338_v59 = vpop.f32.mrf.mxu0 }
 0x103   :  { %v1379_v60 = vpop.f32.mrf.mxu1  ;;  %v1339_v25 = vadd.f32 %v1338_v59, %v228_v21 }
 0x104   :  { %v1340_v61 = vpop.f32.mrf.mxu0 }
 0x105   :  { %v1381_v62 = vpop.f32.mrf.mxu1  ;;  %v1341_v26 = vadd.f32 %v1340_v61, %v232_v24  ;;  %v1380_v27 = vadd.f32 %v1379_v60, %v1339_v25 }
 0x106   :  { %v1342_v2 = vpop.f32.mrf.mxu0 }
 0x107   :  { %v1383_v3 = vpop.f32.mrf.mxu1  ;;  %v1382_v31 = vadd.f32 %v1381_v62, %v1341_v26 }
 0x108   :  { %v1343_v4 = vpop.f32.mrf.mxu0 }
 0x109   :  { %v1384_v5 = vpop.f32.mrf.mxu1 }
 0x10b   :  { %v1461_v8 = vpop.f32.mrf.mxu1 }
 0x10d   :  { %v1463_v9 = vpop.f32.mrf.mxu1 }
 0x10f   :  { %v1465_v13 = vpop.f32.mrf.mxu1 }
 0x111   :  { %v1466_v14 = vpop.f32.mrf.mxu1 }
 0x142   :  { %v1420_v29 = vpop.f32.mrf.mxu0 }
 0x143   :  { %v1421_v32 = vadd.f32 %v1420_v29, %v1380_v27 }
 0x144   :  { %v1422_v33 = vpop.f32.mrf.mxu0 }
 0x145   :  { %v1462_v34 = vadd.f32 %v1461_v8, %v1421_v32  ;;  %v1423_v35 = vadd.f32 %v1422_v33, %v1382_v31 }
 0x146   :  { %v1424_v36 = vpop.f32.mrf.mxu0 }
 0x147   :  { %v1464_v37 = vadd.f32 %v1463_v9, %v1423_v35  ;;  %v1632_v38 = vmax.f32 %v1462_v34, 0.0 }
 0x148   :  { %v1425_v39 = vpop.f32.mrf.mxu0 }
 0x149   :  { %v1633_v40 = vmax.f32 %v1464_v37, 0.0  ;;  %v1636_v43 = vpack.c.bf16 %v1632_v38, %v1632_v38 }
 0x14b   :  { %v1502_v41 = vpop.f32.mrf.mxu1  ;;  %v1637_v17 = vpack.c.bf16 %v1633_v40, %v1633_v40 }
 0x14c   :  { %v1503_v49 = vadd.f32 %v1502_v41, %v236_v46 }
 0x14d   :  { %v1504_v28 = vpop.f32.mrf.mxu1  ;;  %1939 = vmatprep.mubr.bf16.mxu0 %v1637_v17 }
 0x14e   :  { %1940 = vmatmul.mubr.bf16.vlgmr.msra.gmra.mxu0 %v1636_v43  ;;  %v1505_v50 = vadd.f32 %v1504_v28, %v240_v47 }
 0x14f   :  { %v1506_v0 = vpop.f32.mrf.mxu1 }
 0x151   :  { %v1507_v44 = vpop.f32.mrf.mxu1 }
 0x182   :  { %v1543_v45 = vpop.f32.mrf.mxu0 }
 0x183   :  { %v1544_v51 = vadd.f32 %v1543_v45, %v1503_v49 }
 0x184   :  { %v1545_v11 = vpop.f32.mrf.mxu0 }
 0x185   :  { %v1546_v54 = vadd.f32 %v1545_v11, %v1505_v50 }
 0x186   :  { %v1547_v48 = vpop.f32.mrf.mxu0 }
 0x188   :  { %v1548_v22 = vpop.f32.mrf.mxu0 }
 0x18a   :  { %v1625_v53 = vpop.f32.mrf.mxu0 }
 0x18b   :  { %v1584_v52 = vpop.f32.mrf.mxu1 }
 0x18c   :  { %v1585_v55 = vadd.f32 %v1584_v52, %v1544_v51  ;;  %v1627_v57 = vpop.f32.mrf.mxu0 }
 0x18d   :  { %v1586_v56 = vpop.f32.mrf.mxu1 }
 0x18e   :  { %v1626_v58 = vadd.f32 %v1625_v53, %v1585_v55  ;;  %v1587_v59 = vadd.f32 %v1586_v56, %v1546_v54  ;;  %v1629_v61 = vpop.f32.mrf.mxu0 }
 0x18f   :  { %v1588_v60 = vpop.f32.mrf.mxu1 }
 0x190   :  { %v1628_v42 = vadd.f32 %v1627_v57, %v1587_v59  ;;  %v1634_v62 = vmax.f32 %v1626_v58, 0.0  ;;  %v1630_v1 = vpop.f32.mrf.mxu0 }
 0x191   :  { %v1589_v63 = vpop.f32.mrf.mxu1 }
 0x192   :  { %v1635_v2 = vmax.f32 %v1628_v42, 0.0  ;;  %v1638_v4 = vpack.c.bf16 %v1634_v62, %v1634_v62 }
 0x194   :  { %v1639_v3 = vpack.c.bf16 %v1635_v2, %v1635_v2 }
 0x196   :  { %2238 = vmatprep.mubr.msk.bf16.mxu1 %vm1899_vm2, %v1639_v3 }
 0x197   :  { %1980 = vmatmul.mubr.bf16.vlgmr.msra.gmra.mxu1 %v1638_v4 }
 0x20e   :  { %v2255_v5 = vpop.f32.mrf.mxu0 }
 0x210   :  { %v2256_v6 = vpop.f32.mrf.mxu0 }
 0x211   :  { %v2257_v7 = vadd.f32 %v2256_v6, %v2255_v5 }
 0x212   :  { %v2258_v8 = vpop.f32.mrf.mxu0 }
 0x213   :  { %v1942_v14 = vadd.f32 %v2257_v7, %v2205_v10 }
 0x214   :  { %v2259_v9 = vpop.f32.mrf.mxu0 }
 0x257   :  { %v2277_v12 = vpop.f32.mrf.mxu1 }
 0x259   :  { %v2278_v13 = vpop.f32.mrf.mxu1 }
 0x25a   :  { %v2279_v15 = vadd.f32 %v2278_v13, %v2277_v12 }
 0x25b   :  { %v2280_v16 = vpop.f32.mrf.mxu1 }
 0x25c   :  { %v1982_v18 = vadd.f32 %v2279_v15, %v1942_v14 }
 0x25d   :  { %v2281_v19 = vpop.f32.mrf.mxu1 }
 0x25e   :  { %1988 = vst.msk [vmem:[#allocation2] sm:$0x3] %vm1987_vm3, %v1982_v18 }
 0x25f   :  { %2631 = shalt.err (!%p2628_p4)
}
 0x260   :  { %1998 = dma.vmem_to_hbm [thread:$0]  %s1996_s19, 32, %s3441_s5, [#allocation3]  }
 0x261   :  { %2640 = dma.done.wait [#allocation3], 32  }
 0x262   :  { %2641 = vsyncadd [#allocation3], 4294967264 }
 0x263   :  { %2002 = vsyncpa [#allocation3], 1 }

</bundles_post_ra>
